<compile_context>
chip_gen: v7x
topology: tpu7x:2x2x1
jax: 0.10.0
libtpu: 0.0.40
codegen_flags: <defaults>
</compile_context>

<pallas_src>
import functools
import math

import jax
import jax.numpy as jnp
from jax import lax
from jax.experimental import pallas as pl
from jax.experimental.pallas import tpu as pltpu


def _mask_attention_kernel(*refs, scale, has_mask, kv_len, needs_kv_mask,
                           mxu_dtype):
    """One grid step = (batch b, q-tile qi, kv-tile ki); all H heads per step.

    q_ref   : (1, TQ, H, E)
    k_ref   : (1, TK, H, E)
    v_ref   : (1, TK, H, D)
    mask_ref: (1, mH, TQ, TK)   (only if has_mask; mH is 1 or H)
    o_ref   : (1, TQ, H*D)      lane-dense output slab
    m_sc    : (H, TQ, 1) f32    running row max
    l_sc    : (H, TQ, 1) f32    running softmax denominator (unmasked)
    acc_sc  : (H, TQ, D) f32    running masked-prob @ V accumulator
    """
    if has_mask:
        q_ref, k_ref, v_ref, mask_ref, o_ref, m_sc, l_sc, acc_sc = refs
    else:
        q_ref, k_ref, v_ref, o_ref, m_sc, l_sc, acc_sc = refs
        mask_ref = None

    num_heads = q_ref.shape[2]
    head_dim = v_ref.shape[3]
    tq = q_ref.shape[1]
    tk = k_ref.shape[1]

    ki = pl.program_id(2)

    @pl.when(ki == 0)
    def _():
        m_sc[...] = jnp.full(m_sc.shape, -jnp.inf, m_sc.dtype)
        l_sc[...] = jnp.zeros(l_sc.shape, l_sc.dtype)
        acc_sc[...] = jnp.zeros(acc_sc.shape, acc_sc.dtype)

    # Validity of key columns when S was padded up to a tile multiple.  Padded
    # columns are forced to -inf BEFORE the exp so they never contribute to
    # the softmax denominator (the user mask cannot do this: it is applied
    # post-softmax).  Hoisted out of the head loop.
    if needs_kv_mask:
        col = lax.broadcasted_iota(jnp.int32, (tq, tk), 1) + ki * tk
        kv_valid = col < kv_len
    else:
        kv_valid = None

    mask_h_full = has_mask and (mask_ref.shape[1] == num_heads)

    for h in range(num_heads):
        # Scale q (TQ*E multiplies) instead of the score tile (TQ*TK).
        q_h = (q_ref[0, :, h, :].astype(jnp.float32) * scale).astype(mxu_dtype)
        k_h = k_ref[0, :, h, :].astype(mxu_dtype)
        v_h = v_ref[0, :, h, :].astype(mxu_dtype)

        # scores tile = q @ k^T on the MXU (bf16 inputs, f32 accumulation).
        s = lax.dot_general(q_h, k_h, (((1,), (1,)), ((), ())),
                            preferred_element_type=jnp.float32)
        if needs_kv_mask:
            s = jnp.where(kv_valid, s, -jnp.inf)

        m_prev = m_sc[h]                                    # (TQ, 1)
        m_new = jnp.maximum(m_prev, s.max(axis=-1, keepdims=True))
        alpha = jnp.exp(m_prev - m_new)
        p = jnp.exp(s - m_new)                              # unmasked probs

        # Denominator over UNMASKED scores (mask is post-softmax).
        l_sc[h] = alpha * l_sc[h] + p.sum(axis=-1, keepdims=True)

        if has_mask:
            mk = mask_ref[0, h if mask_h_full else 0, :, :]
            p = p * mk.astype(jnp.float32)

        acc_sc[h] = alpha * acc_sc[h] + jnp.dot(
            p.astype(mxu_dtype), v_h, preferred_element_type=jnp.float32)
        m_sc[h] = m_new

    @pl.when(ki == pl.num_programs(2) - 1)
    def _():
        for h in range(num_heads):
            inv_l = pl.reciprocal(l_sc[h], approx=True)     # EUP, not a divide
            o_ref[0, :, h * head_dim:(h + 1) * head_dim] = (
                acc_sc[h] * inv_l).astype(o_ref.dtype)


def _round_up(x, m):
    return ((x + m - 1) // m) * m


def _plan_tiles(length, pref, lane_aligned):
    """Pick (tile, padded_length).  tile is a multiple of 8 (or 128 when it is
    a lane dim of the mask block) unless it covers the whole padded length."""
    if length <= pref:
        t = _round_up(length, 8)
        return t, t
    t = max(8, (pref // 8) * 8)
    if lane_aligned:
        t = max(128, (t // 128) * 128)
    return t, _round_up(length, t)


@functools.partial(
    jax.jit, static_argnames=("scale", "block_q", "block_kv", "mxu_dtype"))
def mask_attention(queries, keys, values, mask=None, *, scale=None,
                   block_q=256, block_kv=256, mxu_dtype=jnp.bfloat16):
    """queries: (B, L, H, E), keys: (B, S, H, E), values: (B, S, H, D),
    mask: optional, broadcastable to (B, H, L, S).  Returns (B, L, H, D)."""
    B, L, H, E = queries.shape
    _, S, _, D = values.shape
    if scale is None:
        scale = 1.0 / math.sqrt(E)
    scale = float(scale)

    has_mask = mask is not None
    tq, l_pad = _plan_tiles(L, block_q, lane_aligned=False)
    tk, s_pad = _plan_tiles(S, block_kv, lane_aligned=has_mask)

    q, k, v = queries, keys, values
    if l_pad != L:
        q = jnp.pad(q, ((0, 0), (0, l_pad - L), (0, 0), (0, 0)))
    if s_pad != S:
        k = jnp.pad(k, ((0, 0), (0, s_pad - S), (0, 0), (0, 0)))
        v = jnp.pad(v, ((0, 0), (0, s_pad - S), (0, 0), (0, 0)))

    in_specs = [
        pl.BlockSpec((1, tq, H, E), lambda b, qi, ki: (b, qi, 0, 0)),   # q
        pl.BlockSpec((1, tk, H, E), lambda b, qi, ki: (b, ki, 0, 0)),   # k
        pl.BlockSpec((1, tk, H, D), lambda b, qi, ki: (b, ki, 0, 0)),   # v
    ]
    args = [q, k, v]

    if has_mask:
        m = jnp.asarray(mask)
        while m.ndim < 4:
            m = m[None]
        if m.shape[2] == 1 and L > 1:          # rare: broadcast singleton L
            m = jnp.broadcast_to(m, (m.shape[0], m.shape[1], L, m.shape[3]))
        if m.shape[3] == 1 and S > 1:          # rare: broadcast singleton S
            m = jnp.broadcast_to(m, (m.shape[0], m.shape[1], m.shape[2], S))
        if m.shape[0] not in (1, B) or m.shape[1] not in (1, H) or \
           m.shape[2] != L or m.shape[3] != S:
            raise ValueError(f"mask shape {m.shape} not broadcastable to "
                             f"({B},{H},{L},{S})")
        # Compact HBM stream: 0/1 masks travel as bf16 (exact for 0/1); keep
        # f32 only for arbitrary float mask weights.
        if m.dtype == jnp.bool_ or jnp.issubdtype(m.dtype, jnp.integer):
            m = m.astype(jnp.bfloat16)
        elif m.dtype == jnp.float64:
            m = m.astype(jnp.float32)
        pad_l, pad_s = l_pad - m.shape[2], s_pad - m.shape[3]
        if pad_l or pad_s:
            m = jnp.pad(m, ((0, 0), (0, 0), (0, pad_l), (0, pad_s)))
        b_full = (m.shape[0] == B)
        mask_h = m.shape[1]
        in_specs.append(pl.BlockSpec(
            (1, mask_h, tq, tk),
            lambda b, qi, ki: ((b if b_full else 0), 0, qi, ki)))
        args.append(m)

    kernel = functools.partial(
        _mask_attention_kernel, scale=scale, has_mask=has_mask, kv_len=S,
        needs_kv_mask=(s_pad != S), mxu_dtype=mxu_dtype)

    out = pl.pallas_call(
        kernel,
        out_shape=jax.ShapeDtypeStruct((B, l_pad, H * D), queries.dtype),
        grid_spec=pltpu.PrefetchScalarGridSpec(
            num_scalar_prefetch=0,
            grid=(B, l_pad // tq, s_pad // tk),
            in_specs=in_specs,
            out_specs=pl.BlockSpec((1, tq, H * D),
                                   lambda b, qi, ki: (b, qi, 0)),
            scratch_shapes=[
                pltpu.VMEM((H, tq, 1), jnp.float32),    # running max
                pltpu.VMEM((H, tq, 1), jnp.float32),    # running denominator
                pltpu.VMEM((H, tq, D), jnp.float32),    # output accumulator
            ],
        ),
        compiler_params=pltpu.CompilerParams(
            dimension_semantics=("parallel", "parallel", "arbitrary")),
    )(*args)

    if l_pad != L:
        out = out[:, :L, :]
    return out.reshape(B, L, H, D)          # free reshape of contiguous dims


def _reference(queries, keys, values, mask=None, scale=None):
    # pure-JAX reference mirroring the PyTorch forward (eval mode)
    _, _, _, E = queries.shape
    if scale is None:
        scale = 1.0 / math.sqrt(E)
    scores = jnp.einsum("blhe,bshe->bhls", queries, keys)
    A = jax.nn.softmax(scale * scores, axis=-1)
    if mask is not None:
        A = A * mask
    return jnp.einsum("bhls,bshd->blhd", A, values)


if __name__ == "__main__":
    B, H, E, D = 2, 4, 32, 32

    # --- test 1: aligned shapes, boolean mask, f32-MXU path ------------------
    L = S = 8
    kq, kk, kv, km = jax.random.split(jax.random.PRNGKey(0), 4)
    q = jax.random.normal(kq, (B, L, H, E), dtype=jnp.float32)
    k = jax.random.normal(kk, (B, S, H, E), dtype=jnp.float32)
    v = jax.random.normal(kv, (B, S, H, D), dtype=jnp.float32)
    mask = jax.random.uniform(km, (B, H, L, S)) > 0.3

    out = jax.block_until_ready(
        mask_attention(q, k, v, mask, mxu_dtype=jnp.float32))
    ref = _reference(q, k, v, mask.astype(jnp.float32))
    assert out.shape == (B, L, H, D)
    assert jnp.allclose(out, ref, atol=1e-2, rtol=1e-2), "test1 mismatch"

    # --- test 2: multi kv-tile online softmax, unmasked, bf16 MXU ------------
    S2 = 16
    k2 = jax.random.normal(kk, (B, S2, H, E), dtype=jnp.float32)
    v2 = jax.random.normal(kv, (B, S2, H, D), dtype=jnp.float32)
    out2 = jax.block_until_ready(mask_attention(q, k2, v2, None, block_kv=8))
    ref2 = _reference(q, k2, v2, None)
    assert jnp.allclose(out2, ref2, atol=5e-2, rtol=5e-2), "test2 mismatch"

    # --- test 3: unaligned L/S (padding + -inf column mask), broadcast-H mask
    L3, S3 = 10, 12
    kq3, kk3, kv3, km3 = jax.random.split(jax.random.PRNGKey(1), 4)
    q3 = jax.random.normal(kq3, (B, L3, H, E), dtype=jnp.float32)
    k3 = jax.random.normal(kk3, (B, S3, H, E), dtype=jnp.float32)
    v3 = jax.random.normal(kv3, (B, S3, H, D), dtype=jnp.float32)
    mask3 = (jax.random.uniform(km3, (B, 1, L3, S3)) > 0.25).astype(jnp.float32)
    out3 = jax.block_until_ready(mask_attention(q3, k3, v3, mask3))
    ref3 = _reference(q3, k3, v3, mask3)
    assert out3.shape == (B, L3, H, D)
    assert jnp.allclose(out3, ref3, atol=5e-2, rtol=5e-2), "test3 mismatch"

    # --- test 4: multiple q and kv tiles with a streamed boolean mask --------
    L4 = S4 = 256
    kq4, kk4, kv4, km4 = jax.random.split(jax.random.PRNGKey(2), 4)
    q4 = jax.random.normal(kq4, (1, L4, H, E), dtype=jnp.float32)
    k4 = jax.random.normal(kk4, (1, S4, H, E), dtype=jnp.float32)
    v4 = jax.random.normal(kv4, (1, S4, H, D), dtype=jnp.float32)
    mask4 = jax.random.uniform(km4, (1, H, L4, S4)) > 0.5
    out4 = jax.block_until_ready(
        mask_attention(q4, k4, v4, mask4, block_q=128, block_kv=128))
    ref4 = _reference(q4, k4, v4, mask4.astype(jnp.float32))
    assert jnp.allclose(out4, ref4, atol=5e-2, rtol=5e-2), "test4 mismatch"

    print("KERNEL_OK")
</pallas_src>

<mosaic_0001>
module attributes {stable_mosaic.version = 11 : i64} {
  func.func @_mask_attention_kernel(%arg0: i32, %arg1: i32, %arg2: i32, %arg3: memref<1x8x4x32xf32, #tpu.memory_space<vmem>>, %arg4: memref<1x8x4x32xf32, #tpu.memory_space<vmem>>, %arg5: memref<1x8x4x32xf32, #tpu.memory_space<vmem>>, %arg6: memref<1x4x8x8xbf16, #tpu.memory_space<vmem>>, %arg7: memref<1x8x128xf32, #tpu.memory_space<vmem>>, %arg8: memref<4x8x1xf32, #tpu.memory_space<vmem>>, %arg9: memref<4x8x1xf32, #tpu.memory_space<vmem>>, %arg10: memref<4x8x32xf32, #tpu.memory_space<vmem>>) attributes {dimension_semantics = [#tpu.dimension_semantics<parallel>, #tpu.dimension_semantics<parallel>, #tpu.dimension_semantics<arbitrary>], iteration_bounds = array<i64: 2, 1, 1>, scalar_prefetch = 0 : i64, scratch_operands = 3 : i64, tpu.core_type = #tpu.core_type<tc>, window_params = [{transform_indices = @transform_0, window_bounds = array<i64: 1, 8, 4, 32>}, {transform_indices = @transform_1, window_bounds = array<i64: 1, 8, 4, 32>}, {transform_indices = @transform_2, window_bounds = array<i64: 1, 8, 4, 32>}, {transform_indices = @transform_3, window_bounds = array<i64: 1, 4, 8, 8>}, {transform_indices = @transform_4, window_bounds = array<i64: 1, 8, 128>}]} {
    %c0_i32 = arith.constant 0 : i32
    %0 = arith.cmpi eq, %arg2, %c0_i32 : i32
    %1 = arith.extui %0 : i1 to i32
    %c0_i32_0 = arith.constant 0 : i32
    %2 = arith.cmpi ne, %1, %c0_i32_0 : i32
    scf.if %2 {
      %cst_154 = arith.constant 0xFF800000 : f32
      %182 = vector.broadcast %cst_154 : f32 to vector<4x8x1xf32>
      %c0_155 = arith.constant 0 : index
      %c0_156 = arith.constant 0 : index
      %c0_157 = arith.constant 0 : index
      %183 = vector.load %arg8[%c0_155, %c0_156, %c0_157] : memref<4x8x1xf32, #tpu.memory_space<vmem>>, vector<4x8x1xf32>
      tpu.vector_store %arg8[%c0_155, %c0_156, %c0_157], %182 {strides = array<i32>} : memref<4x8x1xf32, #tpu.memory_space<vmem>>, vector<4x8x1xf32>,
      %cst_158 = arith.constant 0.000000e+00 : f32
      %184 = vector.broadcast %cst_158 : f32 to vector<4x8x1xf32>
      %c0_159 = arith.constant 0 : index
      %c0_160 = arith.constant 0 : index
      %c0_161 = arith.constant 0 : index
      %185 = vector.load %arg9[%c0_159, %c0_160, %c0_161] : memref<4x8x1xf32, #tpu.memory_space<vmem>>, vector<4x8x1xf32>
      tpu.vector_store %arg9[%c0_159, %c0_160, %c0_161], %184 {strides = array<i32>} : memref<4x8x1xf32, #tpu.memory_space<vmem>>, vector<4x8x1xf32>,
      %cst_162 = arith.constant 0.000000e+00 : f32
      %186 = vector.broadcast %cst_162 : f32 to vector<4x8x32xf32>
      %c0_163 = arith.constant 0 : index
      %c0_164 = arith.constant 0 : index
      %c0_165 = arith.constant 0 : index
      %187 = vector.load %arg10[%c0_163, %c0_164, %c0_165] : memref<4x8x32xf32, #tpu.memory_space<vmem>>, vector<4x8x32xf32>
      tpu.vector_store %arg10[%c0_163, %c0_164, %c0_165], %186 {strides = array<i32>} : memref<4x8x32xf32, #tpu.memory_space<vmem>>, vector<4x8x32xf32>,
    } else {
    }
    %c0 = arith.constant 0 : index
    %c0_1 = arith.constant 0 : index
    %c0_2 = arith.constant 0 : index
    %c0_3 = arith.constant 0 : index
    %3 = vector.load %arg3[%c0, %c0_1, %c0_2, %c0_3] : memref<1x8x4x32xf32, #tpu.memory_space<vmem>>, vector<1x8x1x32xf32>
    %4 = vector.shape_cast %3 : vector<1x8x1x32xf32> to vector<8x32xf32>
    %cst = arith.constant 0.176776692 : f32
    %5 = vector.broadcast %cst : f32 to vector<8x32xf32>
    %6 = arith.mulf %4, %5 : vector<8x32xf32>
    %c0_4 = arith.constant 0 : index
    %c0_5 = arith.constant 0 : index
    %c0_6 = arith.constant 0 : index
    %c0_7 = arith.constant 0 : index
    %7 = vector.load %arg4[%c0_4, %c0_5, %c0_6, %c0_7] : memref<1x8x4x32xf32, #tpu.memory_space<vmem>>, vector<1x8x1x32xf32>
    %8 = vector.shape_cast %7 : vector<1x8x1x32xf32> to vector<8x32xf32>
    %c0_8 = arith.constant 0 : index
    %c0_9 = arith.constant 0 : index
    %c0_10 = arith.constant 0 : index
    %c0_11 = arith.constant 0 : index
    %9 = vector.load %arg5[%c0_8, %c0_9, %c0_10, %c0_11] : memref<1x8x4x32xf32, #tpu.memory_space<vmem>>, vector<1x8x1x32xf32>
    %10 = vector.shape_cast %9 : vector<1x8x1x32xf32> to vector<8x32xf32>
    %cst_12 = arith.constant dense<0.000000e+00> : vector<8x8xf32>
    %11 = tpu.matmul %6, %8, %cst_12 {dimension_numbers = #tpu.dot_dimension_numbers<[1], [1], [0], [0], [0, 0, 1, 0], [], []>} : vector<8x32xf32>, vector<8x32xf32>, vector<8x8xf32> -> vector<8x8xf32>
    %c0_13 = arith.constant 0 : index
    %c0_14 = arith.constant 0 : index
    %c0_15 = arith.constant 0 : index
    %12 = vector.load %arg8[%c0_13, %c0_14, %c0_15] : memref<4x8x1xf32, #tpu.memory_space<vmem>>, vector<1x8x1xf32>
    %13 = vector.shape_cast %12 : vector<1x8x1xf32> to vector<8x1xf32>
    %cst_16 = arith.constant dense<0xFF800000> : vector<8xf32>
    %14 = vector.multi_reduction <maximumf>, %11, %cst_16 [1] : vector<8x8xf32> to vector<8xf32>
    %15 = vector.shape_cast %14 : vector<8xf32> to vector<8x1xf32>
    %16 = arith.maximumf %13, %15 : vector<8x1xf32>
    %17 = arith.subf %13, %16 : vector<8x1xf32>
    %18 = math.exp %17 : vector<8x1xf32>
    %19 = vector.broadcast %16 : vector<8x1xf32> to vector<8x8xf32>
    %20 = arith.subf %11, %19 : vector<8x8xf32>
    %21 = math.exp %20 : vector<8x8xf32>
    %c0_17 = arith.constant 0 : index
    %c0_18 = arith.constant 0 : index
    %c0_19 = arith.constant 0 : index
    %22 = vector.load %arg9[%c0_17, %c0_18, %c0_19] : memref<4x8x1xf32, #tpu.memory_space<vmem>>, vector<1x8x1xf32>
    %23 = vector.shape_cast %22 : vector<1x8x1xf32> to vector<8x1xf32>
    %24 = arith.mulf %18, %23 : vector<8x1xf32>
    %cst_20 = arith.constant dense<0.000000e+00> : vector<8xf32>
    %25 = vector.multi_reduction <add>, %21, %cst_20 [1] : vector<8x8xf32> to vector<8xf32>
    %26 = vector.shape_cast %25 : vector<8xf32> to vector<8x1xf32>
    %27 = arith.addf %24, %26 : vector<8x1xf32>
    %c0_21 = arith.constant 0 : index
    %c0_22 = arith.constant 0 : index
    %c0_23 = arith.constant 0 : index
    %28 = vector.load %arg9[%c0_21, %c0_22, %c0_23] : memref<4x8x1xf32, #tpu.memory_space<vmem>>, vector<1x8x1xf32>
    %29 = vector.shape_cast %28 : vector<1x8x1xf32> to vector<8x1xf32>
    %30 = vector.shape_cast %27 : vector<8x1xf32> to vector<1x8x1xf32>
    tpu.vector_store %arg9[%c0_21, %c0_22, %c0_23], %30 {strides = array<i32>} : memref<4x8x1xf32, #tpu.memory_space<vmem>>, vector<1x8x1xf32>,
    %c0_24 = arith.constant 0 : index
    %c0_25 = arith.constant 0 : index
    %c0_26 = arith.constant 0 : index
    %c0_27 = arith.constant 0 : index
    %31 = vector.load %arg6[%c0_24, %c0_25, %c0_26, %c0_27] : memref<1x4x8x8xbf16, #tpu.memory_space<vmem>>, vector<1x1x8x8xbf16>
    %32 = vector.shape_cast %31 : vector<1x1x8x8xbf16> to vector<8x8xbf16>
    %33 = arith.extf %32 : vector<8x8xbf16> to vector<8x8xf32>
    %34 = arith.mulf %21, %33 : vector<8x8xf32>
    %c0_28 = arith.constant 0 : index
    %c0_29 = arith.constant 0 : index
    %c0_30 = arith.constant 0 : index
    %35 = vector.load %arg10[%c0_28, %c0_29, %c0_30] : memref<4x8x32xf32, #tpu.memory_space<vmem>>, vector<1x8x32xf32>
    %36 = vector.shape_cast %35 : vector<1x8x32xf32> to vector<8x32xf32>
    %37 = vector.broadcast %18 : vector<8x1xf32> to vector<8x32xf32>
    %38 = arith.mulf %37, %36 : vector<8x32xf32>
    %cst_31 = arith.constant dense<0.000000e+00> : vector<8x32xf32>
    %39 = tpu.matmul %34, %10, %cst_31 {dimension_numbers = #tpu.dot_dimension_numbers<[1], [0], [0], [1], [0, 0, 1, 1], [], []>} : vector<8x8xf32>, vector<8x32xf32>, vector<8x32xf32> -> vector<8x32xf32>
    %40 = arith.addf %38, %39 : vector<8x32xf32>
    %c0_32 = arith.constant 0 : index
    %c0_33 = arith.constant 0 : index
    %c0_34 = arith.constant 0 : index
    %41 = vector.load %arg10[%c0_32, %c0_33, %c0_34] : memref<4x8x32xf32, #tpu.memory_space<vmem>>, vector<1x8x32xf32>
    %42 = vector.shape_cast %41 : vector<1x8x32xf32> to vector<8x32xf32>
    %43 = vector.shape_cast %40 : vector<8x32xf32> to vector<1x8x32xf32>
    tpu.vector_store %arg10[%c0_32, %c0_33, %c0_34], %43 {strides = array<i32>} : memref<4x8x32xf32, #tpu.memory_space<vmem>>, vector<1x8x32xf32>,
    %c0_35 = arith.constant 0 : index
    %c0_36 = arith.constant 0 : index
    %c0_37 = arith.constant 0 : index
    %44 = vector.load %arg8[%c0_35, %c0_36, %c0_37] : memref<4x8x1xf32, #tpu.memory_space<vmem>>, vector<1x8x1xf32>
    %45 = vector.shape_cast %44 : vector<1x8x1xf32> to vector<8x1xf32>
    %46 = vector.shape_cast %16 : vector<8x1xf32> to vector<1x8x1xf32>
    tpu.vector_store %arg8[%c0_35, %c0_36, %c0_37], %46 {strides = array<i32>} : memref<4x8x1xf32, #tpu.memory_space<vmem>>, vector<1x8x1xf32>,
    %c0_38 = arith.constant 0 : index
    %c0_39 = arith.constant 0 : index
    %c1 = arith.constant 1 : index
    %c0_40 = arith.constant 0 : index
    %47 = vector.load %arg3[%c0_38, %c0_39, %c1, %c0_40] : memref<1x8x4x32xf32, #tpu.memory_space<vmem>>, vector<1x8x1x32xf32>
    %48 = vector.shape_cast %47 : vector<1x8x1x32xf32> to vector<8x32xf32>
    %cst_41 = arith.constant 0.176776692 : f32
    %49 = vector.broadcast %cst_41 : f32 to vector<8x32xf32>
    %50 = arith.mulf %48, %49 : vector<8x32xf32>
    %c0_42 = arith.constant 0 : index
    %c0_43 = arith.constant 0 : index
    %c1_44 = arith.constant 1 : index
    %c0_45 = arith.constant 0 : index
    %51 = vector.load %arg4[%c0_42, %c0_43, %c1_44, %c0_45] : memref<1x8x4x32xf32, #tpu.memory_space<vmem>>, vector<1x8x1x32xf32>
    %52 = vector.shape_cast %51 : vector<1x8x1x32xf32> to vector<8x32xf32>
    %c0_46 = arith.constant 0 : index
    %c0_47 = arith.constant 0 : index
    %c1_48 = arith.constant 1 : index
    %c0_49 = arith.constant 0 : index
    %53 = vector.load %arg5[%c0_46, %c0_47, %c1_48, %c0_49] : memref<1x8x4x32xf32, #tpu.memory_space<vmem>>, vector<1x8x1x32xf32>
    %54 = vector.shape_cast %53 : vector<1x8x1x32xf32> to vector<8x32xf32>
    %cst_50 = arith.constant dense<0.000000e+00> : vector<8x8xf32>
    %55 = tpu.matmul %50, %52, %cst_50 {dimension_numbers = #tpu.dot_dimension_numbers<[1], [1], [0], [0], [0, 0, 1, 0], [], []>} : vector<8x32xf32>, vector<8x32xf32>, vector<8x8xf32> -> vector<8x8xf32>
    %c1_51 = arith.constant 1 : index
    %c0_52 = arith.constant 0 : index
    %c0_53 = arith.constant 0 : index
    %56 = vector.load %arg8[%c1_51, %c0_52, %c0_53] : memref<4x8x1xf32, #tpu.memory_space<vmem>>, vector<1x8x1xf32>
    %57 = vector.shape_cast %56 : vector<1x8x1xf32> to vector<8x1xf32>
    %cst_54 = arith.constant dense<0xFF800000> : vector<8xf32>
    %58 = vector.multi_reduction <maximumf>, %55, %cst_54 [1] : vector<8x8xf32> to vector<8xf32>
    %59 = vector.shape_cast %58 : vector<8xf32> to vector<8x1xf32>
    %60 = arith.maximumf %57, %59 : vector<8x1xf32>
    %61 = arith.subf %57, %60 : vector<8x1xf32>
    %62 = math.exp %61 : vector<8x1xf32>
    %63 = vector.broadcast %60 : vector<8x1xf32> to vector<8x8xf32>
    %64 = arith.subf %55, %63 : vector<8x8xf32>
    %65 = math.exp %64 : vector<8x8xf32>
    %c1_55 = arith.constant 1 : index
    %c0_56 = arith.constant 0 : index
    %c0_57 = arith.constant 0 : index
    %66 = vector.load %arg9[%c1_55, %c0_56, %c0_57] : memref<4x8x1xf32, #tpu.memory_space<vmem>>, vector<1x8x1xf32>
    %67 = vector.shape_cast %66 : vector<1x8x1xf32> to vector<8x1xf32>
    %68 = arith.mulf %62, %67 : vector<8x1xf32>
    %cst_58 = arith.constant dense<0.000000e+00> : vector<8xf32>
    %69 = vector.multi_reduction <add>, %65, %cst_58 [1] : vector<8x8xf32> to vector<8xf32>
    %70 = vector.shape_cast %69 : vector<8xf32> to vector<8x1xf32>
    %71 = arith.addf %68, %70 : vector<8x1xf32>
    %c1_59 = arith.constant 1 : index
    %c0_60 = arith.constant 0 : index
    %c0_61 = arith.constant 0 : index
    %72 = vector.load %arg9[%c1_59, %c0_60, %c0_61] : memref<4x8x1xf32, #tpu.memory_space<vmem>>, vector<1x8x1xf32>
    %73 = vector.shape_cast %72 : vector<1x8x1xf32> to vector<8x1xf32>
    %74 = vector.shape_cast %71 : vector<8x1xf32> to vector<1x8x1xf32>
    tpu.vector_store %arg9[%c1_59, %c0_60, %c0_61], %74 {strides = array<i32>} : memref<4x8x1xf32, #tpu.memory_space<vmem>>, vector<1x8x1xf32>,
    %c0_62 = arith.constant 0 : index
    %c1_63 = arith.constant 1 : index
    %c0_64 = arith.constant 0 : index
    %c0_65 = arith.constant 0 : index
    %75 = vector.load %arg6[%c0_62, %c1_63, %c0_64, %c0_65] : memref<1x4x8x8xbf16, #tpu.memory_space<vmem>>, vector<1x1x8x8xbf16>
    %76 = vector.shape_cast %75 : vector<1x1x8x8xbf16> to vector<8x8xbf16>
    %77 = arith.extf %76 : vector<8x8xbf16> to vector<8x8xf32>
    %78 = arith.mulf %65, %77 : vector<8x8xf32>
    %c1_66 = arith.constant 1 : index
    %c0_67 = arith.constant 0 : index
    %c0_68 = arith.constant 0 : index
    %79 = vector.load %arg10[%c1_66, %c0_67, %c0_68] : memref<4x8x32xf32, #tpu.memory_space<vmem>>, vector<1x8x32xf32>
    %80 = vector.shape_cast %79 : vector<1x8x32xf32> to vector<8x32xf32>
    %81 = vector.broadcast %62 : vector<8x1xf32> to vector<8x32xf32>
    %82 = arith.mulf %81, %80 : vector<8x32xf32>
    %cst_69 = arith.constant dense<0.000000e+00> : vector<8x32xf32>
    %83 = tpu.matmul %78, %54, %cst_69 {dimension_numbers = #tpu.dot_dimension_numbers<[1], [0], [0], [1], [0, 0, 1, 1], [], []>} : vector<8x8xf32>, vector<8x32xf32>, vector<8x32xf32> -> vector<8x32xf32>
    %84 = arith.addf %82, %83 : vector<8x32xf32>
    %c1_70 = arith.constant 1 : index
    %c0_71 = arith.constant 0 : index
    %c0_72 = arith.constant 0 : index
    %85 = vector.load %arg10[%c1_70, %c0_71, %c0_72] : memref<4x8x32xf32, #tpu.memory_space<vmem>>, vector<1x8x32xf32>
    %86 = vector.shape_cast %85 : vector<1x8x32xf32> to vector<8x32xf32>
    %87 = vector.shape_cast %84 : vector<8x32xf32> to vector<1x8x32xf32>
    tpu.vector_store %arg10[%c1_70, %c0_71, %c0_72], %87 {strides = array<i32>} : memref<4x8x32xf32, #tpu.memory_space<vmem>>, vector<1x8x32xf32>,
    %c1_73 = arith.constant 1 : index
    %c0_74 = arith.constant 0 : index
    %c0_75 = arith.constant 0 : index
    %88 = vector.load %arg8[%c1_73, %c0_74, %c0_75] : memref<4x8x1xf32, #tpu.memory_space<vmem>>, vector<1x8x1xf32>
    %89 = vector.shape_cast %88 : vector<1x8x1xf32> to vector<8x1xf32>
    %90 = vector.shape_cast %60 : vector<8x1xf32> to vector<1x8x1xf32>
    tpu.vector_store %arg8[%c1_73, %c0_74, %c0_75], %90 {strides = array<i32>} : memref<4x8x1xf32, #tpu.memory_space<vmem>>, vector<1x8x1xf32>,
    %c0_76 = arith.constant 0 : index
    %c0_77 = arith.constant 0 : index
    %c2 = arith.constant 2 : index
    %c0_78 = arith.constant 0 : index
    %91 = vector.load %arg3[%c0_76, %c0_77, %c2, %c0_78] : memref<1x8x4x32xf32, #tpu.memory_space<vmem>>, vector<1x8x1x32xf32>
    %92 = vector.shape_cast %91 : vector<1x8x1x32xf32> to vector<8x32xf32>
    %cst_79 = arith.constant 0.176776692 : f32
    %93 = vector.broadcast %cst_79 : f32 to vector<8x32xf32>
    %94 = arith.mulf %92, %93 : vector<8x32xf32>
    %c0_80 = arith.constant 0 : index
    %c0_81 = arith.constant 0 : index
    %c2_82 = arith.constant 2 : index
    %c0_83 = arith.constant 0 : index
    %95 = vector.load %arg4[%c0_80, %c0_81, %c2_82, %c0_83] : memref<1x8x4x32xf32, #tpu.memory_space<vmem>>, vector<1x8x1x32xf32>
    %96 = vector.shape_cast %95 : vector<1x8x1x32xf32> to vector<8x32xf32>
    %c0_84 = arith.constant 0 : index
    %c0_85 = arith.constant 0 : index
    %c2_86 = arith.constant 2 : index
    %c0_87 = arith.constant 0 : index
    %97 = vector.load %arg5[%c0_84, %c0_85, %c2_86, %c0_87] : memref<1x8x4x32xf32, #tpu.memory_space<vmem>>, vector<1x8x1x32xf32>
    %98 = vector.shape_cast %97 : vector<1x8x1x32xf32> to vector<8x32xf32>
    %cst_88 = arith.constant dense<0.000000e+00> : vector<8x8xf32>
    %99 = tpu.matmul %94, %96, %cst_88 {dimension_numbers = #tpu.dot_dimension_numbers<[1], [1], [0], [0], [0, 0, 1, 0], [], []>} : vector<8x32xf32>, vector<8x32xf32>, vector<8x8xf32> -> vector<8x8xf32>
    %c2_89 = arith.constant 2 : index
    %c0_90 = arith.constant 0 : index
    %c0_91 = arith.constant 0 : index
    %100 = vector.load %arg8[%c2_89, %c0_90, %c0_91] : memref<4x8x1xf32, #tpu.memory_space<vmem>>, vector<1x8x1xf32>
    %101 = vector.shape_cast %100 : vector<1x8x1xf32> to vector<8x1xf32>
    %cst_92 = arith.constant dense<0xFF800000> : vector<8xf32>
    %102 = vector.multi_reduction <maximumf>, %99, %cst_92 [1] : vector<8x8xf32> to vector<8xf32>
    %103 = vector.shape_cast %102 : vector<8xf32> to vector<8x1xf32>
    %104 = arith.maximumf %101, %103 : vector<8x1xf32>
    %105 = arith.subf %101, %104 : vector<8x1xf32>
    %106 = math.exp %105 : vector<8x1xf32>
    %107 = vector.broadcast %104 : vector<8x1xf32> to vector<8x8xf32>
    %108 = arith.subf %99, %107 : vector<8x8xf32>
    %109 = math.exp %108 : vector<8x8xf32>
    %c2_93 = arith.constant 2 : index
    %c0_94 = arith.constant 0 : index
    %c0_95 = arith.constant 0 : index
    %110 = vector.load %arg9[%c2_93, %c0_94, %c0_95] : memref<4x8x1xf32, #tpu.memory_space<vmem>>, vector<1x8x1xf32>
    %111 = vector.shape_cast %110 : vector<1x8x1xf32> to vector<8x1xf32>
    %112 = arith.mulf %106, %111 : vector<8x1xf32>
    %cst_96 = arith.constant dense<0.000000e+00> : vector<8xf32>
    %113 = vector.multi_reduction <add>, %109, %cst_96 [1] : vector<8x8xf32> to vector<8xf32>
    %114 = vector.shape_cast %113 : vector<8xf32> to vector<8x1xf32>
    %115 = arith.addf %112, %114 : vector<8x1xf32>
    %c2_97 = arith.constant 2 : index
    %c0_98 = arith.constant 0 : index
    %c0_99 = arith.constant 0 : index
    %116 = vector.load %arg9[%c2_97, %c0_98, %c0_99] : memref<4x8x1xf32, #tpu.memory_space<vmem>>, vector<1x8x1xf32>
    %117 = vector.shape_cast %116 : vector<1x8x1xf32> to vector<8x1xf32>
    %118 = vector.shape_cast %115 : vector<8x1xf32> to vector<1x8x1xf32>
    tpu.vector_store %arg9[%c2_97, %c0_98, %c0_99], %118 {strides = array<i32>} : memref<4x8x1xf32, #tpu.memory_space<vmem>>, vector<1x8x1xf32>,
    %c0_100 = arith.constant 0 : index
    %c2_101 = arith.constant 2 : index
    %c0_102 = arith.constant 0 : index
    %c0_103 = arith.constant 0 : index
    %119 = vector.load %arg6[%c0_100, %c2_101, %c0_102, %c0_103] : memref<1x4x8x8xbf16, #tpu.memory_space<vmem>>, vector<1x1x8x8xbf16>
    %120 = vector.shape_cast %119 : vector<1x1x8x8xbf16> to vector<8x8xbf16>
    %121 = arith.extf %120 : vector<8x8xbf16> to vector<8x8xf32>
    %122 = arith.mulf %109, %121 : vector<8x8xf32>
    %c2_104 = arith.constant 2 : index
    %c0_105 = arith.constant 0 : index
    %c0_106 = arith.constant 0 : index
    %123 = vector.load %arg10[%c2_104, %c0_105, %c0_106] : memref<4x8x32xf32, #tpu.memory_space<vmem>>, vector<1x8x32xf32>
    %124 = vector.shape_cast %123 : vector<1x8x32xf32> to vector<8x32xf32>
    %125 = vector.broadcast %106 : vector<8x1xf32> to vector<8x32xf32>
    %126 = arith.mulf %125, %124 : vector<8x32xf32>
    %cst_107 = arith.constant dense<0.000000e+00> : vector<8x32xf32>
    %127 = tpu.matmul %122, %98, %cst_107 {dimension_numbers = #tpu.dot_dimension_numbers<[1], [0], [0], [1], [0, 0, 1, 1], [], []>} : vector<8x8xf32>, vector<8x32xf32>, vector<8x32xf32> -> vector<8x32xf32>
    %128 = arith.addf %126, %127 : vector<8x32xf32>
    %c2_108 = arith.constant 2 : index
    %c0_109 = arith.constant 0 : index
    %c0_110 = arith.constant 0 : index
    %129 = vector.load %arg10[%c2_108, %c0_109, %c0_110] : memref<4x8x32xf32, #tpu.memory_space<vmem>>, vector<1x8x32xf32>
    %130 = vector.shape_cast %129 : vector<1x8x32xf32> to vector<8x32xf32>
    %131 = vector.shape_cast %128 : vector<8x32xf32> to vector<1x8x32xf32>
    tpu.vector_store %arg10[%c2_108, %c0_109, %c0_110], %131 {strides = array<i32>} : memref<4x8x32xf32, #tpu.memory_space<vmem>>, vector<1x8x32xf32>,
    %c2_111 = arith.constant 2 : index
    %c0_112 = arith.constant 0 : index
    %c0_113 = arith.constant 0 : index
    %132 = vector.load %arg8[%c2_111, %c0_112, %c0_113] : memref<4x8x1xf32, #tpu.memory_space<vmem>>, vector<1x8x1xf32>
    %133 = vector.shape_cast %132 : vector<1x8x1xf32> to vector<8x1xf32>
    %134 = vector.shape_cast %104 : vector<8x1xf32> to vector<1x8x1xf32>
    tpu.vector_store %arg8[%c2_111, %c0_112, %c0_113], %134 {strides = array<i32>} : memref<4x8x1xf32, #tpu.memory_space<vmem>>, vector<1x8x1xf32>,
    %c0_114 = arith.constant 0 : index
    %c0_115 = arith.constant 0 : index
    %c3 = arith.constant 3 : index
    %c0_116 = arith.constant 0 : index
    %135 = vector.load %arg3[%c0_114, %c0_115, %c3, %c0_116] : memref<1x8x4x32xf32, #tpu.memory_space<vmem>>, vector<1x8x1x32xf32>
    %136 = vector.shape_cast %135 : vector<1x8x1x32xf32> to vector<8x32xf32>
    %cst_117 = arith.constant 0.176776692 : f32
    %137 = vector.broadcast %cst_117 : f32 to vector<8x32xf32>
    %138 = arith.mulf %136, %137 : vector<8x32xf32>
    %c0_118 = arith.constant 0 : index
    %c0_119 = arith.constant 0 : index
    %c3_120 = arith.constant 3 : index
    %c0_121 = arith.constant 0 : index
    %139 = vector.load %arg4[%c0_118, %c0_119, %c3_120, %c0_121] : memref<1x8x4x32xf32, #tpu.memory_space<vmem>>, vector<1x8x1x32xf32>
    %140 = vector.shape_cast %139 : vector<1x8x1x32xf32> to vector<8x32xf32>
    %c0_122 = arith.constant 0 : index
    %c0_123 = arith.constant 0 : index
    %c3_124 = arith.constant 3 : index
    %c0_125 = arith.constant 0 : index
    %141 = vector.load %arg5[%c0_122, %c0_123, %c3_124, %c0_125] : memref<1x8x4x32xf32, #tpu.memory_space<vmem>>, vector<1x8x1x32xf32>
    %142 = vector.shape_cast %141 : vector<1x8x1x32xf32> to vector<8x32xf32>
    %cst_126 = arith.constant dense<0.000000e+00> : vector<8x8xf32>
    %143 = tpu.matmul %138, %140, %cst_126 {dimension_numbers = #tpu.dot_dimension_numbers<[1], [1], [0], [0], [0, 0, 1, 0], [], []>} : vector<8x32xf32>, vector<8x32xf32>, vector<8x8xf32> -> vector<8x8xf32>
    %c3_127 = arith.constant 3 : index
    %c0_128 = arith.constant 0 : index
    %c0_129 = arith.constant 0 : index
    %144 = vector.load %arg8[%c3_127, %c0_128, %c0_129] : memref<4x8x1xf32, #tpu.memory_space<vmem>>, vector<1x8x1xf32>
    %145 = vector.shape_cast %144 : vector<1x8x1xf32> to vector<8x1xf32>
    %cst_130 = arith.constant dense<0xFF800000> : vector<8xf32>
    %146 = vector.multi_reduction <maximumf>, %143, %cst_130 [1] : vector<8x8xf32> to vector<8xf32>
    %147 = vector.shape_cast %146 : vector<8xf32> to vector<8x1xf32>
    %148 = arith.maximumf %145, %147 : vector<8x1xf32>
    %149 = arith.subf %145, %148 : vector<8x1xf32>
    %150 = math.exp %149 : vector<8x1xf32>
    %151 = vector.broadcast %148 : vector<8x1xf32> to vector<8x8xf32>
    %152 = arith.subf %143, %151 : vector<8x8xf32>
    %153 = math.exp %152 : vector<8x8xf32>
    %c3_131 = arith.constant 3 : index
    %c0_132 = arith.constant 0 : index
    %c0_133 = arith.constant 0 : index
    %154 = vector.load %arg9[%c3_131, %c0_132, %c0_133] : memref<4x8x1xf32, #tpu.memory_space<vmem>>, vector<1x8x1xf32>
    %155 = vector.shape_cast %154 : vector<1x8x1xf32> to vector<8x1xf32>
    %156 = arith.mulf %150, %155 : vector<8x1xf32>
    %cst_134 = arith.constant dense<0.000000e+00> : vector<8xf32>
    %157 = vector.multi_reduction <add>, %153, %cst_134 [1] : vector<8x8xf32> to vector<8xf32>
    %158 = vector.shape_cast %157 : vector<8xf32> to vector<8x1xf32>
    %159 = arith.addf %156, %158 : vector<8x1xf32>
    %c3_135 = arith.constant 3 : index
    %c0_136 = arith.constant 0 : index
    %c0_137 = arith.constant 0 : index
    %160 = vector.load %arg9[%c3_135, %c0_136, %c0_137] : memref<4x8x1xf32, #tpu.memory_space<vmem>>, vector<1x8x1xf32>
    %161 = vector.shape_cast %160 : vector<1x8x1xf32> to vector<8x1xf32>
    %162 = vector.shape_cast %159 : vector<8x1xf32> to vector<1x8x1xf32>
    tpu.vector_store %arg9[%c3_135, %c0_136, %c0_137], %162 {strides = array<i32>} : memref<4x8x1xf32, #tpu.memory_space<vmem>>, vector<1x8x1xf32>,
    %c0_138 = arith.constant 0 : index
    %c3_139 = arith.constant 3 : index
    %c0_140 = arith.constant 0 : index
    %c0_141 = arith.constant 0 : index
    %163 = vector.load %arg6[%c0_138, %c3_139, %c0_140, %c0_141] : memref<1x4x8x8xbf16, #tpu.memory_space<vmem>>, vector<1x1x8x8xbf16>
    %164 = vector.shape_cast %163 : vector<1x1x8x8xbf16> to vector<8x8xbf16>
    %165 = arith.extf %164 : vector<8x8xbf16> to vector<8x8xf32>
    %166 = arith.mulf %153, %165 : vector<8x8xf32>
    %c3_142 = arith.constant 3 : index
    %c0_143 = arith.constant 0 : index
    %c0_144 = arith.constant 0 : index
    %167 = vector.load %arg10[%c3_142, %c0_143, %c0_144] : memref<4x8x32xf32, #tpu.memory_space<vmem>>, vector<1x8x32xf32>
    %168 = vector.shape_cast %167 : vector<1x8x32xf32> to vector<8x32xf32>
    %169 = vector.broadcast %150 : vector<8x1xf32> to vector<8x32xf32>
    %170 = arith.mulf %169, %168 : vector<8x32xf32>
    %cst_145 = arith.constant dense<0.000000e+00> : vector<8x32xf32>
    %171 = tpu.matmul %166, %142, %cst_145 {dimension_numbers = #tpu.dot_dimension_numbers<[1], [0], [0], [1], [0, 0, 1, 1], [], []>} : vector<8x8xf32>, vector<8x32xf32>, vector<8x32xf32> -> vector<8x32xf32>
    %172 = arith.addf %170, %171 : vector<8x32xf32>
    %c3_146 = arith.constant 3 : index
    %c0_147 = arith.constant 0 : index
    %c0_148 = arith.constant 0 : index
    %173 = vector.load %arg10[%c3_146, %c0_147, %c0_148] : memref<4x8x32xf32, #tpu.memory_space<vmem>>, vector<1x8x32xf32>
    %174 = vector.shape_cast %173 : vector<1x8x32xf32> to vector<8x32xf32>
    %175 = vector.shape_cast %172 : vector<8x32xf32> to vector<1x8x32xf32>
    tpu.vector_store %arg10[%c3_146, %c0_147, %c0_148], %175 {strides = array<i32>} : memref<4x8x32xf32, #tpu.memory_space<vmem>>, vector<1x8x32xf32>,
    %c3_149 = arith.constant 3 : index
    %c0_150 = arith.constant 0 : index
    %c0_151 = arith.constant 0 : index
    %176 = vector.load %arg8[%c3_149, %c0_150, %c0_151] : memref<4x8x1xf32, #tpu.memory_space<vmem>>, vector<1x8x1xf32>
    %177 = vector.shape_cast %176 : vector<1x8x1xf32> to vector<8x1xf32>
    %178 = vector.shape_cast %148 : vector<8x1xf32> to vector<1x8x1xf32>
    tpu.vector_store %arg8[%c3_149, %c0_150, %c0_151], %178 {strides = array<i32>} : memref<4x8x1xf32, #tpu.memory_space<vmem>>, vector<1x8x1xf32>,
    %c0_i32_152 = arith.constant 0 : i32
    %179 = arith.cmpi eq, %arg2, %c0_i32_152 : i32
    %180 = arith.extui %179 : i1 to i32
    %c0_i32_153 = arith.constant 0 : i32
    %181 = arith.cmpi ne, %180, %c0_i32_153 : i32
    scf.if %181 {
      %c0_154 = arith.constant 0 : index
      %c0_155 = arith.constant 0 : index
      %c0_156 = arith.constant 0 : index
      %182 = vector.load %arg9[%c0_154, %c0_155, %c0_156] : memref<4x8x1xf32, #tpu.memory_space<vmem>>, vector<1x8x1xf32>
      %183 = vector.shape_cast %182 : vector<1x8x1xf32> to vector<8x1xf32>
      %184 = tpu.reciprocal %183 {approx = true} : vector<8x1xf32> -> vector<8x1xf32>
      %c0_157 = arith.constant 0 : index
      %c0_158 = arith.constant 0 : index
      %c0_159 = arith.constant 0 : index
      %185 = vector.load %arg10[%c0_157, %c0_158, %c0_159] : memref<4x8x32xf32, #tpu.memory_space<vmem>>, vector<1x8x32xf32>
      %186 = vector.shape_cast %185 : vector<1x8x32xf32> to vector<8x32xf32>
      %187 = vector.broadcast %184 : vector<8x1xf32> to vector<8x32xf32>
      %188 = arith.mulf %186, %187 : vector<8x32xf32>
      %c0_160 = arith.constant 0 : index
      %c0_161 = arith.constant 0 : index
      %c0_162 = arith.constant 0 : index
      %189 = vector.load %arg7[%c0_160, %c0_161, %c0_162] : memref<1x8x128xf32, #tpu.memory_space<vmem>>, vector<1x8x32xf32>
      %190 = vector.shape_cast %189 : vector<1x8x32xf32> to vector<8x32xf32>
      %191 = vector.shape_cast %188 : vector<8x32xf32> to vector<1x8x32xf32>
      tpu.vector_store %arg7[%c0_160, %c0_161, %c0_162], %191 {strides = array<i32>} : memref<1x8x128xf32, #tpu.memory_space<vmem>>, vector<1x8x32xf32>,
      %c1_163 = arith.constant 1 : index
      %c0_164 = arith.constant 0 : index
      %c0_165 = arith.constant 0 : index
      %192 = vector.load %arg9[%c1_163, %c0_164, %c0_165] : memref<4x8x1xf32, #tpu.memory_space<vmem>>, vector<1x8x1xf32>
      %193 = vector.shape_cast %192 : vector<1x8x1xf32> to vector<8x1xf32>
      %194 = tpu.reciprocal %193 {approx = true} : vector<8x1xf32> -> vector<8x1xf32>
      %c1_166 = arith.constant 1 : index
      %c0_167 = arith.constant 0 : index
      %c0_168 = arith.constant 0 : index
      %195 = vector.load %arg10[%c1_166, %c0_167, %c0_168] : memref<4x8x32xf32, #tpu.memory_space<vmem>>, vector<1x8x32xf32>
      %196 = vector.shape_cast %195 : vector<1x8x32xf32> to vector<8x32xf32>
      %197 = vector.broadcast %194 : vector<8x1xf32> to vector<8x32xf32>
      %198 = arith.mulf %196, %197 : vector<8x32xf32>
      %c0_169 = arith.constant 0 : index
      %c0_170 = arith.constant 0 : index
      %c32 = arith.constant 32 : index
      %199 = vector.load %arg7[%c0_169, %c0_170, %c32] : memref<1x8x128xf32, #tpu.memory_space<vmem>>, vector<1x8x32xf32>
      %200 = vector.shape_cast %199 : vector<1x8x32xf32> to vector<8x32xf32>
      %201 = vector.shape_cast %198 : vector<8x32xf32> to vector<1x8x32xf32>
      tpu.vector_store %arg7[%c0_169, %c0_170, %c32], %201 {strides = array<i32>} : memref<1x8x128xf32, #tpu.memory_space<vmem>>, vector<1x8x32xf32>,
      %c2_171 = arith.constant 2 : index
      %c0_172 = arith.constant 0 : index
      %c0_173 = arith.constant 0 : index
      %202 = vector.load %arg9[%c2_171, %c0_172, %c0_173] : memref<4x8x1xf32, #tpu.memory_space<vmem>>, vector<1x8x1xf32>
      %203 = vector.shape_cast %202 : vector<1x8x1xf32> to vector<8x1xf32>
      %204 = tpu.reciprocal %203 {approx = true} : vector<8x1xf32> -> vector<8x1xf32>
      %c2_174 = arith.constant 2 : index
      %c0_175 = arith.constant 0 : index
      %c0_176 = arith.constant 0 : index
      %205 = vector.load %arg10[%c2_174, %c0_175, %c0_176] : memref<4x8x32xf32, #tpu.memory_space<vmem>>, vector<1x8x32xf32>
      %206 = vector.shape_cast %205 : vector<1x8x32xf32> to vector<8x32xf32>
      %207 = vector.broadcast %204 : vector<8x1xf32> to vector<8x32xf32>
      %208 = arith.mulf %206, %207 : vector<8x32xf32>
      %c0_177 = arith.constant 0 : index
      %c0_178 = arith.constant 0 : index
      %c64 = arith.constant 64 : index
      %209 = vector.load %arg7[%c0_177, %c0_178, %c64] : memref<1x8x128xf32, #tpu.memory_space<vmem>>, vector<1x8x32xf32>
      %210 = vector.shape_cast %209 : vector<1x8x32xf32> to vector<8x32xf32>
      %211 = vector.shape_cast %208 : vector<8x32xf32> to vector<1x8x32xf32>
      tpu.vector_store %arg7[%c0_177, %c0_178, %c64], %211 {strides = array<i32>} : memref<1x8x128xf32, #tpu.memory_space<vmem>>, vector<1x8x32xf32>,
      %c3_179 = arith.constant 3 : index
      %c0_180 = arith.constant 0 : index
      %c0_181 = arith.constant 0 : index
      %212 = vector.load %arg9[%c3_179, %c0_180, %c0_181] : memref<4x8x1xf32, #tpu.memory_space<vmem>>, vector<1x8x1xf32>
      %213 = vector.shape_cast %212 : vector<1x8x1xf32> to vector<8x1xf32>
      %214 = tpu.reciprocal %213 {approx = true} : vector<8x1xf32> -> vector<8x1xf32>
      %c3_182 = arith.constant 3 : index
      %c0_183 = arith.constant 0 : index
      %c0_184 = arith.constant 0 : index
      %215 = vector.load %arg10[%c3_182, %c0_183, %c0_184] : memref<4x8x32xf32, #tpu.memory_space<vmem>>, vector<1x8x32xf32>
      %216 = vector.shape_cast %215 : vector<1x8x32xf32> to vector<8x32xf32>
      %217 = vector.broadcast %214 : vector<8x1xf32> to vector<8x32xf32>
      %218 = arith.mulf %216, %217 : vector<8x32xf32>
      %c0_185 = arith.constant 0 : index
      %c0_186 = arith.constant 0 : index
      %c96 = arith.constant 96 : index
      %219 = vector.load %arg7[%c0_185, %c0_186, %c96] : memref<1x8x128xf32, #tpu.memory_space<vmem>>, vector<1x8x32xf32>
      %220 = vector.shape_cast %219 : vector<1x8x32xf32> to vector<8x32xf32>
      %221 = vector.shape_cast %218 : vector<8x32xf32> to vector<1x8x32xf32>
      tpu.vector_store %arg7[%c0_185, %c0_186, %c96], %221 {strides = array<i32>} : memref<1x8x128xf32, #tpu.memory_space<vmem>>, vector<1x8x32xf32>,
    } else {
    }
    return
  }
  func.func @transform_0(%arg0: i32, %arg1: i32, %arg2: i32) -> (i32, i32, i32, i32) {
    %c0_i32 = arith.constant 0 : i32
    %c0_i32_0 = arith.constant 0 : i32
    %c0_i32_1 = arith.constant 0 : i32
    return %arg0, %arg1, %c0_i32, %c0_i32_0 : i32, i32, i32, i32
  }
  func.func @transform_1(%arg0: i32, %arg1: i32, %arg2: i32) -> (i32, i32, i32, i32) {
    %c0_i32 = arith.constant 0 : i32
    %c0_i32_0 = arith.constant 0 : i32
    %c0_i32_1 = arith.constant 0 : i32
    return %arg0, %arg2, %c0_i32, %c0_i32_0 : i32, i32, i32, i32
  }
  func.func @transform_2(%arg0: i32, %arg1: i32, %arg2: i32) -> (i32, i32, i32, i32) {
    %c0_i32 = arith.constant 0 : i32
    %c0_i32_0 = arith.constant 0 : i32
    %c0_i32_1 = arith.constant 0 : i32
    return %arg0, %arg2, %c0_i32, %c0_i32_0 : i32, i32, i32, i32
  }
  func.func @transform_3(%arg0: i32, %arg1: i32, %arg2: i32) -> (i32, i32, i32, i32) {
    %c0_i32 = arith.constant 0 : i32
    %c0_i32_0 = arith.constant 0 : i32
    return %arg0, %c0_i32, %arg1, %arg2 : i32, i32, i32, i32
  }
  func.func @transform_4(%arg0: i32, %arg1: i32, %arg2: i32) -> (i32, i32, i32) {
    %c0_i32 = arith.constant 0 : i32
    %c0_i32_0 = arith.constant 0 : i32
    return %arg0, %arg1, %c0_i32 : i32, i32, i32
  }
}

</mosaic_0001>

<bundles_post_ra>
// kernel: mask_attention.1
= control target key start
LH: loop header
LB: loop body
LE: loop exit
PB: predicated region body
PF: predicated region fallthrough
CT: control target
= control target key end

     0   :  { %9 = vsyncpa [#allocation6], 0  ;;  %s2763_s0 = inlined_call_operand.hbm [shape: f32[2,8,4,32], index: 0, kind: input, shape index: {}]   ;;  %s2764_s1 = inlined_call_operand.hbm [shape: f32[2,8,4,32], index: 1, kind: input, shape index: {}]   ;;  %s2765_s2 = inlined_call_operand.hbm [shape: f32[2,8,4,32], index: 2, kind: input, shape index: {}]   ;;  %s2766_s3 = inlined_call_operand.vmem [shape: bf16[2,4,8,8], index: 3, kind: input, shape index: {}]   ;;  %s2767_s4 = inlined_call_operand.vmem [shape: f32[2,8,128], index: 4, kind: output, shape index: {}]  }
   0x1   :  { %11 = vsyncpa [#allocation6 + $0x1], 0 }
   0x2   :  { %12 = vsyncpa [#allocation8], 0 }
   0x3   :  { %14 = vsyncpa [#allocation8 + $0x1], 0  ;;  %s2142_s15 = smov 0   ;;  %s2144_s16 = smov 0  }
   0x4   :  { %s2146_s17 = smov 0   ;;  %s2148_s18 = smov 0  }
   0x5   :  { %s2150_s19 = smov 0   ;;  %s2152_s20 = smov 0  }
   0x6 LB: > { %s2769_s21 = sadd.s32 4294967295, %s2103_s20   ;;  %s39_s22 = sadd.s32 1, %s2099_s19  ;;  %s2103_s20 = sphi %s2152_s20, %s20_s20   ;;  %s2099_s19 = sphi %s2150_s19, %s2785_s19   ;;  %s2095_s18 = sphi %s2148_s18, %s2784_s18   ;;  %s2091_s17 = sphi %s2146_s17, %s2783_s17   ;;  %s2087_s16 = sphi %s2144_s16, %s2782_s16   ;;  %s2083_s15 = sphi %s2142_s15, %s2781_s15  }
   0x7   : > { %p41_p0 = scmp.ge.s32.totalorder %s39_s22, 2  ;;  %s48_s23 = sadd.s32 1, %s2091_s17 }
   0x8   : > { %p55_p1 = scmp.ne.s32.totalorder %s2091_s17, %s2087_s16  ;;  %p56_p2 = scmp.eq.s32.totalorder %s2103_s20, 0 }
   0x9   : > { %s2787_s22 = smov (%p41_p0, %s39_s22), 0  ;;  %p61_p4 = scmp.ne.s32.totalorder %s2087_s16, %s2083_s15 }
   0xa   : > { %p57_p3 = por %p56_p2, %p55_p1  ;;  %s43_s24 = ssub.s32 %s2099_s19, %s2787_s22 }
   0xb   : > { %p62_p5 = scmp.eq.s32.totalorder %s2769_s21, 0  ;;  %p46_p6 = scmp.eq.s32.totalorder %s43_s24, 0 }
   0xc   : > { %p1875_p8 = scmp.lt.s32.totalorder %s2103_s20, 2  ;;  %s199_s27 = sand.u32 1, %s2091_s17  }
   0xd   : > { %p2183_p7 = por %p62_p5, %p61_p4  ;;  %s2193_s28 = sshll.u32 %s2099_s19, 9 }
   0xe   : > { %s2189_s26 = scalar_select %p46_p6, %s2091_s17, %s48_s23  }
   0xf   : > { %s2772_s25 = scalar_select %p2183_p7, 1, 0 }
  0x10   : > { %s2197_s29 = sshll.u32 %s199_s27, 5  ;;  %p2199_p9 = pnand %p1875_p8, %p57_p3 }
  0x11   : > { %s222_s5 = sand.u32 1, %s2103_s20   ;;  %s2208_s8 = scalar_lea.hbm %s2764_s1, %s2193_s28 }
  0x12   : > { %s226_s9 = scalar_lea.vmem [#allocation7], %s2197_s29  ;;  %s2214_s11 = scalar_lea.sflag [#allocation8], %s222_s5 }
  0x13   : > { %s235_s10 = sshll.u32 %s226_s9, 4  ;;  %s1959_s12 = scalar_lea.hbm %s2208_s8, 512  ;;  %s2211_s10 = int_to_ptr.vmem [resolvable:$true] %s235_s10 }
  0x14   : > { %p1960_p11 = scmp.ne.s32.totalorder %s2208_s8, %s1959_s12  ;;  %p2220_p12 = pneg %p2199_p9 }
  0x15   : > { %s1964_s23 = scalar_lea.hbm %s2764_s1, 1024  ;;  %p1965_p1 = scmp.lt.u32.totalorder %s2208_s8, %s2764_s1 }
  0x16   : > { %p1962_p13 = pnand %p2220_p12, %p1960_p11  ;;  %p1966_p2 = scmp.lt.u32.totalorder %s1964_s23, %s1959_s12 }
  0x17   : > { %p1968_p4 = scmp.lt.u32.totalorder %s1959_s12, %s2208_s8 }
  0x18   : > { %p1963_p0 = pneg %p1962_p13  ;;  %p1967_p3 = por %p1966_p2, %p1965_p1 }
  0x1a   : > { %p1969_p5 = por %p1968_p4, %p1967_p3 }
  0x1c   : > { %p1970_p6 = pnand %p1969_p5, %p1963_p0 }
  0x1e   : > { %1973 = shalt.err (!%p1970_p6)
}
  0x1f   : > { %s1974_s5 = scalar_lea.vmem %s2211_s10, 512  ;;  %s2105_s7 = smov [#allocation7]  }
  0x20   : > { %p1975_p8 = scmp.ne.s32.totalorder %s2211_s10, %s1974_s5  ;;  %s1979_s9 = sshll.u32 %s2105_s7, 4  ;;  %s1980_s9 = int_to_ptr.vmem [resolvable:$false] %s1979_s9 }
  0x21   : > { %s1981_s14 = scalar_lea.vmem %s1980_s9, 1024  ;;  %p1982_p10 = scmp.lt.s32.totalorder %s2211_s10, %s1980_s9 }
  0x22   : > { %p1977_p11 = pnand %p1975_p8, %p2220_p12  ;;  %p1983_p7 = scmp.lt.s32.totalorder %s1981_s14, %s1974_s5 }
  0x24   : > { %p1978_p13 = pneg %p1977_p11  ;;  %p1984_p1 = por %p1983_p7, %p1982_p10 }
  0x26   : > { %p1985_p2 = pnand %p1984_p1, %p1978_p13 }
  0x28   : > { %1988 = shalt.err (!%p1985_p2)
}
  0x29   : > { %s2770_s12 = smov 64   ;;  %s2107_s15 = smov 4  }
  0x2a   : > { %1871 = dma.hbm_to_vmem [thread:$0]  (!%p2199_p9), %s2208_s8, 512, %s2211_s10, %s2214_s11, %s2770_s12, %s2770_s12, %s2107_s15  }
  0x2b   : > { %p280_p7 = scmp.lt.s32.totalorder %s2103_s20, 3  ;;  %p2775_p10 = scmp.ge.s32.totalorder %s2103_s20, 1 }
  0x2c   : > { %s2258_s5 = scalar_lea.hbm %s2763_s0, %s2193_s28  ;;  %s203_s7 = scalar_lea.vmem [#allocation5], %s2197_s29 }
  0x2d   : > { %p2250_p0 = pnand %p2775_p10, %p280_p7  ;;  %s212_s9 = sshll.u32 %s203_s7, 4  ;;  %s2261_s9 = int_to_ptr.vmem [resolvable:$true] %s212_s9 }
  0x2e   : > { %s2265_s8 = scalar_lea.sflag [#allocation6], %s199_s27  ;;  %s1989_s10 = scalar_lea.hbm %s2258_s5, 512 }
  0x2f   : > { %s2776_s23 = scalar_select %p2250_p0, 1, 0 }
  0x30   : > { %p1990_p3 = scmp.ne.s32.totalorder %s2258_s5, %s1989_s10  ;;  %s1994_s6 = scalar_lea.hbm %s2763_s0, 1024 }
  0x31   : > { %p1995_p6 = scmp.lt.u32.totalorder %s2258_s5, %s2763_s0  ;;  %p1996_p8 = scmp.lt.u32.totalorder %s1994_s6, %s1989_s10 }
  0x32   : > { %p1992_p4 = pnand %p1990_p3, %p2220_p12  ;;  %p1998_p13 = scmp.lt.u32.totalorder %s1989_s10, %s2258_s5 }
  0x33   : > { %p1997_p11 = por %p1996_p8, %p1995_p6 }
  0x34   : > { %p1993_p5 = pneg %p1992_p4 }
  0x35   : > { %p1999_p1 = por %p1998_p13, %p1997_p11 }
  0x37   : > { %p2000_p2 = pnand %p1999_p1, %p1993_p5 }
  0x39   : > { %2003 = shalt.err (!%p2000_p2)
}
  0x3a   : > { %s2004_s27 = scalar_lea.vmem %s2261_s9, 512  ;;  %s2108_s7 = smov [#allocation5]  }
  0x3b   : > { %p2005_p7 = scmp.ne.s32.totalorder %s2261_s9, %s2004_s27  ;;  %s2009_s14 = sshll.u32 %s2108_s7, 4  ;;  %s2010_s14 = int_to_ptr.vmem [resolvable:$false] %s2009_s14 }
  0x3c   : > { %s2011_s21 = scalar_lea.vmem %s2010_s14, 1024  ;;  %p2012_p4 = scmp.lt.s32.totalorder %s2261_s9, %s2010_s14 }
  0x3d   : > { %p2007_p10 = pnand %p2005_p7, %p2220_p12  ;;  %p2013_p0 = scmp.lt.s32.totalorder %s2011_s21, %s2004_s27 }
  0x3f   : > { %p2008_p3 = pneg %p2007_p10  ;;  %p2014_p6 = por %p2013_p0, %p2012_p4 }
  0x41   : > { %p2015_p8 = pnand %p2014_p6, %p2008_p3 }
  0x43   : > { %2018 = shalt.err (!%p2015_p8)
}
  0x44   : > { %s2777_s12 = smov 64   ;;  %s2296_s6 = scalar_lea.hbm %s2765_s2, %s2193_s28 }
  0x45   : > { %1868 = dma.hbm_to_vmem [thread:$0]  (!%p2199_p9), %s2258_s5, 512, %s2261_s9, %s2265_s8, %s2777_s12, %s2777_s12, %s2107_s15  }
  0x46   : > { %s249_s27 = scalar_lea.vmem [#allocation9], %s2197_s29  ;;  %s2019_s14 = scalar_lea.hbm %s2296_s6, 512 }
  0x47   : > { %s258_s7 = sshll.u32 %s249_s27, 4  ;;  %p2020_p0 = scmp.ne.s32.totalorder %s2296_s6, %s2019_s14  ;;  %s2299_s7 = int_to_ptr.vmem [resolvable:$true] %s258_s7 }
  0x48   : > { %s2024_s9 = scalar_lea.hbm %s2765_s2, 1024  ;;  %p2025_p13 = scmp.lt.u32.totalorder %s2296_s6, %s2765_s2 }
  0x49   : > { %p2022_p5 = pnand %p2020_p0, %p2220_p12  ;;  %p2026_p1 = scmp.lt.u32.totalorder %s2024_s9, %s2019_s14 }
  0x4a   : > { %p2028_p7 = scmp.lt.u32.totalorder %s2019_s14, %s2296_s6 }
  0x4b   : > { %p2023_p11 = pneg %p2022_p5  ;;  %p2027_p2 = por %p2026_p1, %p2025_p13 }
  0x4d   : > { %p2029_p10 = por %p2028_p7, %p2027_p2 }
  0x4f   : > { %p2030_p3 = pnand %p2029_p10, %p2023_p11 }
  0x51   : > { %2033 = shalt.err (!%p2030_p3)
}
  0x52   : > { %s2034_s29 = scalar_lea.vmem %s2299_s7, 512  ;;  %s2109_s10 = smov [#allocation9]  }
  0x53   : > { %p2035_p4 = scmp.ne.s32.totalorder %s2299_s7, %s2034_s29  ;;  %s2039_s24 = sshll.u32 %s2109_s10, 4  ;;  %s2040_s24 = int_to_ptr.vmem [resolvable:$false] %s2039_s24 }
  0x54   : > { %s2041_s27 = scalar_lea.vmem %s2040_s24, 1024  ;;  %p2042_p0 = scmp.lt.s32.totalorder %s2299_s7, %s2040_s24 }
  0x55   : > { %p2037_p6 = pnand %p2035_p4, %p2220_p12  ;;  %p2043_p5 = scmp.lt.s32.totalorder %s2041_s27, %s2034_s29 }
  0x57   : > { %p2038_p8 = pneg %p2037_p6  ;;  %p2044_p13 = por %p2043_p5, %p2042_p0 }
  0x59   : > { %p2045_p1 = pnand %p2044_p13, %p2038_p8 }
  0x5b   : > { %2048 = shalt.err (!%p2045_p1)
}
  0x5c   : > { %1874 = dma.hbm_to_vmem [thread:$0]  (!%p2199_p9), %s2296_s6, 512, %s2299_s7, %s2214_s11, %s2777_s12, %s2777_s12, %s2107_s15  }
  0x5d   : > { %p2778_p12 = scmp.ne.s32.totalorder %s2776_s23, 0 }
  0x5e   : > { %s286_s13 = sand.u32 (!%p2778_p12), 1, %s2087_s16   ;;  %p2779_p11 = scmp.ne.s32.totalorder (!%p2778_p12), %s2772_s25, 0 }
  0x5f   : > { %284 = sbr.rel (%p2778_p12) target bundleno = 1552 (0x610), region = 36  ;;  %s2329_s14 = sshll.u32 (!%p2778_p12), %s286_s13, 5 }
  0x60   : > { %s287_s21 = scalar_lea.sflag (!%p2778_p12), [#allocation6], %s286_s13  ;;  %s2332_s5 = scalar_lea.vmem (!%p2778_p12), [#allocation5], %s2329_s14 }
  0x66   : > { %2074 = dma.done.wait (%p2779_p11), %s287_s21, 512  }
  0x67   : > { %2076 = vsyncadd (%p2779_p11), %s287_s21, 4294966784  ;;  %s2780_s30 = sadd.s32 4294967295, %s2103_s20   ;;  %s2341_s23 = scalar_lea.vmem [#allocation7], %s2329_s14 }
  0x68   : > { %s295_s11 = sand.u32 1, %s2780_s30  }
  0x69   : > { %s296_s15 = scalar_lea.sflag [#allocation8], %s295_s11 }
  0x6a   : > { %2078 = dma.done.wait (%p2779_p11), %s296_s15, 1024  }
  0x6b   : > { %2080 = vsyncadd (%p2779_p11), %s296_s15, 4294966272  ;;  %vm390_vm0 = vcmask 261120   ;;  %v2110_v0 = vmov 0.0   ;;  %vm2111_vm1 = vmmov 0   ;;  %vm436_vm2 = vcmask 1041409   ;;  %s2423_s25 = scalar_lea.vmem [#allocation9], %s2329_s14 }
  0x6c   : > { %1819 = vmatprep.subr.mxu0 %v2110_v0  ;;  %391 = vst.msk [vmem:[#allocation4] sm:$0xff] %vm390_vm0, %v2110_v0  ;;  %392 = vst.msk [vmem:[#allocation4 + $0x8] sm:$0xff] %vm390_vm0, %v2110_v0  ;;  %1824 = vmatprep.subr.mxu1 %v2110_v0  ;;  %vm439_vm3 = vcmask 1042434   ;;  %vm442_vm4 = vcmask 1043459   ;;  %vm445_vm5 = vcmask 1044484   ;;  %vm448_vm6 = vcmask 1045509  }
  0x6d   : > { %393 = vst.msk [vmem:[#allocation4 + $0x10] sm:$0xff] %vm390_vm0, %v2110_v0  ;;  %394 = vst.msk [vmem:[#allocation4 + $0x18] sm:$0xff] %vm390_vm0, %v2110_v0  ;;  %1821 = vmatprep.mubr.msk.f32.mxu0 %vm2111_vm1, %v2110_v0  ;;  %1826 = vmatprep.mubr.msk.f32.mxu1 %vm2111_vm1, %v2110_v0  ;;  %vm451_vm7 = vcmask 1046534   ;;  %v411_v1 = vld [vmem:[%s2341_s23] sm:$0x1]  ;;  %vm454_vm8 = vcmask 1047559  }
  0x6e   : > { %v412_v2 = vld [vmem:[%s2341_s23 + $0x4] sm:$0x1]  ;;  %v413_v3 = vld [vmem:[%s2341_s23 + $0x8] sm:$0x1]  ;;  %v414_v4 = vld [vmem:[%s2341_s23 + $0xc] sm:$0x1] }
  0x6f   : > { %v415_v5 = vld [vmem:[%s2341_s23 + $0x10] sm:$0x1]  ;;  %v416_v6 = vld [vmem:[%s2341_s23 + $0x14] sm:$0x1]  ;;  %v417_v7 = vld [vmem:[%s2341_s23 + $0x18] sm:$0x1] }
  0x70   : > { %v418_v8 = vld [vmem:[%s2341_s23 + $0x1c] sm:$0x1]  ;;  %v464_v9 = vrot.slane %v412_v2, 7  ;;  %v466_v10 = vrot.slane %v413_v3, 6  ;;  %v468_v11 = vrot.slane %v414_v4, 5  ;;  %v470_v12 = vrot.slane %v415_v5, 4 }
  0x71   : > { %v472_v13 = vrot.slane %v416_v6, 3  ;;  %v395_v14 = vld [vmem:[%s2332_s5] sm:$0x1]  ;;  %v474_v16 = vrot.slane %v417_v7, 2  ;;  %v476_v17 = vrot.slane %v418_v8, 1  ;;  %vm381_vm9 = vcmask 7168  }
  0x72   : > { %v465_v15 = vsel %vm436_vm2, %v464_v9, %v411_v1  ;;  %v396_v18 = vld [vmem:[%s2332_s5 + $0x4] sm:$0x1]  ;;  %v397_v19 = vld [vmem:[%s2332_s5 + $0x8] sm:$0x1]  ;;  %v398_v21 = vld [vmem:[%s2332_s5 + $0xc] sm:$0x1] }
  0x73   : > { %v467_v20 = vsel %vm439_vm3, %v466_v10, %v465_v15  ;;  %v399_v22 = vld [vmem:[%s2332_s5 + $0x10] sm:$0x1]  ;;  %v400_v23 = vld [vmem:[%s2332_s5 + $0x14] sm:$0x1]  ;;  %v401_v25 = vld [vmem:[%s2332_s5 + $0x18] sm:$0x1] }
  0x74   : > { %v469_v24 = vsel %vm442_vm4, %v468_v11, %v467_v20  ;;  %v402_v26 = vld [vmem:[%s2332_s5 + $0x1c] sm:$0x1]  ;;  %v403_v27 = vmul.f32 0.17677669, %v395_v14  ;;  %v404_v29 = vmul.f32 0.17677669, %v396_v18 }
  0x75   : > { %v471_v28 = vsel %vm445_vm5, %v470_v12, %v469_v24  ;;  %v405_v30 = vmul.f32 0.17677669, %v397_v19  ;;  %v406_v31 = vmul.f32 0.17677669, %v398_v21  ;;  %v407_v33 = vmul.f32 0.17677669, %v399_v22 }
  0x76   : > { %v473_v32 = vsel %vm448_vm6, %v472_v13, %v471_v28  ;;  %v408_v34 = vmul.f32 0.17677669, %v400_v23  ;;  %v409_v35 = vmul.f32 0.17677669, %v401_v25  ;;  %v410_v37 = vmul.f32 0.17677669, %v402_v26 }
  0x77   : > { %v475_v36 = vsel %vm451_vm7, %v474_v16, %v473_v32  ;;  %v435_v38 = vrot.slane %v404_v29, 7  ;;  %v438_v39 = vrot.slane %v405_v30, 6  ;;  %v441_v41 = vrot.slane %v406_v31, 5  ;;  %386 = vst.msk [vmem:[#allocation3] sm:$0xff] %vm381_vm9, %v2110_v0  ;;  %387 = vst.msk [vmem:[#allocation3 + $0x8] sm:$0xff] %vm381_vm9, %v2110_v0  ;;  %p359_p9 = scmp.lt.s32.totalorder %s2095_s18, 1 }
  0x78   : > { %v477_v40 = vsel %vm454_vm8, %v476_v17, %v475_v36  ;;  %v444_v42 = vrot.slane %v407_v33, 4  ;;  %v447_v44 = vrot.slane %v408_v34, 3  ;;  %v450_v46 = vrot.slane %v409_v35, 2  ;;  %388 = vst.msk [vmem:[#allocation3 + $0x10] sm:$0xff] %vm381_vm9, %v2110_v0  ;;  %389 = vst.msk [vmem:[#allocation3 + $0x18] sm:$0xff] %vm381_vm9, %v2110_v0  ;;  %s2115_s24 = smov 64  }
  0x79   : > { %1820 = vmatpush3.xpose.msk.msra.mxu0 %vm390_vm0, %v477_v40  ;;  %v437_v43 = vsel %vm436_vm2, %v435_v38, %v403_v27  ;;  %v453_v48 = vrot.slane %v410_v37, 1  ;;  %v2112_v53 = vmov -inf   ;;  %vm554_vm10 = vcmask 64512   ;;  %v420_v62 = vld [vmem:[%s2423_s25 + $0x4] sm:$0x1]  ;;  %s2789_s18 = smov (!%p359_p9, %s2095_s18), 1 }
  0x7a   : > { %v440_v45 = vsel %vm439_vm3, %v438_v39, %v437_v43  ;;  %1834 = vmatprep.subr.mxu0 %v2110_v0  ;;  %382 = vst.msk [vmem:[#allocation2] sm:$0xff] %vm381_vm9, %v2112_v53  ;;  %383 = vst.msk [vmem:[#allocation2 + $0x8] sm:$0xff] %vm381_vm9, %v2112_v53  ;;  %v2113_v57 = vmov 0   ;;  %v421_v63 = vld [vmem:[%s2423_s25 + $0x8] sm:$0x1]  ;;  %v596_v1 = vrot.slane %v420_v62, 7 }
  0x7b   : > { %v443_v47 = vsel %vm442_vm4, %v441_v41, %v440_v45  ;;  %384 = vst.msk [vmem:[#allocation2 + $0x10] sm:$0xff] %vm381_vm9, %v2112_v53  ;;  %385 = vst.msk [vmem:[#allocation2 + $0x18] sm:$0xff] %vm381_vm9, %v2112_v53  ;;  %1933 = vset.pattern.permute.xlu0 %v2113_v57  ;;  %1934 = vset.pattern.permute.xlu1 %v2113_v57  ;;  %v419_v2 = vld [vmem:[%s2423_s25] sm:$0x1]  ;;  %v422_v3 = vld [vmem:[%s2423_s25 + $0xc] sm:$0x1] }
  0x7c   : > { %v446_v49 = vsel %vm445_vm5, %v444_v42, %v443_v47  ;;  %v598_v4 = vrot.slane %v421_v63, 6  ;;  %v423_v5 = vld [vmem:[%s2423_s25 + $0x10] sm:$0x1]  ;;  %v424_v6 = vld [vmem:[%s2423_s25 + $0x14] sm:$0x1]  ;;  %v597_v8 = vsel %vm436_vm2, %v596_v1, %v419_v2  ;;  %v600_v11 = vrot.slane %v422_v3, 5 }
  0x7d   : > { %v449_v50 = vsel %vm448_vm6, %v447_v44, %v446_v49  ;;  %v425_v7 = vld [vmem:[%s2423_s25 + $0x18] sm:$0x1]  ;;  %v426_v9 = vld [vmem:[%s2423_s25 + $0x1c] sm:$0x1]  ;;  %v602_v12 = vrot.slane %v423_v5, 4  ;;  %v604_v13 = vrot.slane %v424_v6, 3 }
  0x7e   : > { %v452_v51 = vsel %vm451_vm7, %v450_v46, %v449_v50  ;;  %v599_v10 = vsel %vm439_vm3, %v598_v4, %v597_v8  ;;  %v606_v14 = vrot.slane %v425_v7, 2  ;;  %v608_v16 = vrot.slane %v426_v9, 1  ;;  %v704_v21 = vld [vmem:[%s2341_s23 + $0x5] sm:$0x1]  ;;  %v705_v22 = vld [vmem:[%s2341_s23 + $0x9] sm:$0x1] }
  0x7f   : > { %v455_v52 = vsel %vm454_vm8, %v453_v48, %v452_v51  ;;  %v601_v15 = vsel %vm442_vm4, %v600_v11, %v599_v10  ;;  %v706_v23 = vld [vmem:[%s2341_s23 + $0xd] sm:$0x1]  ;;  %v2446_v24 = vld [vmem:[%s2341_s23 + $0x11] sm:$0x1]  ;;  %v688_v25 = vld [vmem:[%s2332_s5 + $0x5] sm:$0x1] }
  0x80   : > { %1822 = vmatmul.mubr.msk.f32.vlgmr.msra.gmra.mrb[0].mxu0 %vm390_vm0, %v455_v52  ;;  %v603_v17 = vsel %vm445_vm5, %v602_v12, %v601_v15  ;;  %v703_v26 = vld [vmem:[%s2341_s23 + $0x1] sm:$0x1]  ;;  %v2454_v27 = vld [vmem:[%s2341_s23 + $0x15] sm:$0x1]  ;;  %v749_v28 = vrot.slane %v704_v21, 7  ;;  %v751_v29 = vrot.slane %v705_v22, 6 }
  0x81   : > { %1836 = vmatprep.mubr.msk.f32.mxu0 %vm2111_vm1, %v2110_v0  ;;  %v2412_v58 = vld [vmem:[#allocation2] sm:$0xff]  ;;  %v605_v18 = vsel %vm448_vm6, %v604_v13, %v603_v17  ;;  %v689_v30 = vld [vmem:[%s2332_s5 + $0x9] sm:$0x1]  ;;  %v2458_v31 = vld [vmem:[%s2341_s23 + $0x19] sm:$0x1]  ;;  %v753_v32 = vrot.slane %v706_v23, 5 }
  0x82   : > { %v607_v19 = vsel %vm451_vm7, %v606_v14, %v605_v18  ;;  %v755_v33 = vrot.slane %v2446_v24, 4  ;;  %v690_v34 = vld [vmem:[%s2332_s5 + $0xd] sm:$0x1]  ;;  %v687_v35 = vld [vmem:[%s2332_s5 + $0x1] sm:$0x1]  ;;  %v757_v43 = vrot.slane %v2454_v27, 3  ;;  %v750_v46 = vsel %vm436_vm2, %v749_v28, %v703_v26 }
  0x83   : > { %v609_v20 = vsel %vm454_vm8, %v608_v16, %v607_v19  ;;  %v691_v36 = vld [vmem:[%s2332_s5 + $0x11] sm:$0x1]  ;;  %v692_v37 = vld [vmem:[%s2332_s5 + $0x15] sm:$0x1]  ;;  %v693_v38 = vld [vmem:[%s2332_s5 + $0x19] sm:$0x1] }
  0x84   : > { %1825 = vmatpush3.msra.mxu1 %v609_v20  ;;  %v694_v39 = vld [vmem:[%s2332_s5 + $0x1d] sm:$0x1]  ;;  %v696_v40 = vmul.f32 0.17677669, %v688_v25  ;;  %v697_v41 = vmul.f32 0.17677669, %v689_v30 }
  0x85   : > { %1829 = vmatprep.subr.mxu1 %v2110_v0  ;;  %v2468_v42 = vld [vmem:[%s2341_s23 + $0x1d] sm:$0x1]  ;;  %v759_v44 = vrot.slane %v2458_v31, 2  ;;  %v2472_v45 = vmul.f32 0.17677669, %v690_v34  ;;  %s1802_s12 = sshll.u32 %s2789_s18, 4 }
  0x86   : > { %v2475_v47 = vmul.f32 0.17677669, %v691_v36  ;;  %v2477_v48 = vmul.f32 0.17677669, %v692_v37  ;;  %v974_v49 = vld [vmem:[%s2332_s5 + $0x6] sm:$0x1]  ;;  %s2496_s9 = scalar_lea.vmem %s2766_s3, %s1802_s12 }
  0x87   : > { %v2480_v50 = vmul.f32 0.17677669, %v693_v38  ;;  %v2482_v51 = vmul.f32 0.17677669, %v694_v39  ;;  %v990_v52 = vld [vmem:[%s2341_s23 + $0x6] sm:$0x1] }
  0x88   : > { %v761_v53 = vrot.slane %v2468_v42, 1  ;;  %v729_v57 = vrot.slane %v697_v41, 6  ;;  %v989_v62 = vld [vmem:[%s2341_s23 + $0x2] sm:$0x1]  ;;  %v991_v63 = vld [vmem:[%s2341_s23 + $0xa] sm:$0x1] }
  0x89   : > { %v982_v1 = vmul.f32 0.17677669, %v974_v49  ;;  %v731_v2 = vrot.slane %v2472_v45, 5  ;;  %v1035_v3 = vrot.slane %v990_v52, 7  ;;  %v973_v4 = vld [vmem:[%s2332_s5 + $0x2] sm:$0x1] }
  0x8a   : > { %v975_v5 = vld [vmem:[%s2332_s5 + $0xa] sm:$0x1]  ;;  %v733_v6 = vrot.slane %v2475_v47, 4  ;;  %v735_v7 = vrot.slane %v2477_v48, 3  ;;  %v737_v8 = vrot.slane %v2480_v50, 2  ;;  %v739_v9 = vrot.slane %v2482_v51, 1 }
  0x8b   : > { %v1260_v10 = vld [vmem:[%s2332_s5 + $0x7] sm:$0x1]  ;;  %v992_v13 = vld [vmem:[%s2341_s23 + $0xe] sm:$0x1]  ;;  %v1037_v17 = vrot.slane %v991_v63, 6  ;;  %v1013_v20 = vrot.slane %v982_v1, 7  ;;  %v1036_v23 = vsel %vm436_vm2, %v1035_v3, %v989_v62 }
  0x8c   : > { %v976_v14 = vld [vmem:[%s2332_s5 + $0xe] sm:$0x1]  ;;  %v1276_v15 = vld [vmem:[%s2341_s23 + $0x7] sm:$0x1]  ;;  %v981_v18 = vmul.f32 0.17677669, %v973_v4 }
  0x8d   : > { %v983_v19 = vmul.f32 0.17677669, %v975_v5  ;;  %v2510_v22 = vld [vmem:[%s2496_s9] sm:$0xff]   ;;  %v977_v24 = vld [vmem:[%s2332_s5 + $0x12] sm:$0x1]  ;;  %v1038_v39 = vsel %vm439_vm3, %v1037_v17, %v1036_v23  ;;  %s1781_s8 = sshll.u32 %s2789_s18, 3 }
  0x8e   : > { %v1261_v25 = vld [vmem:[%s2332_s5 + $0xb] sm:$0x1]  ;;  %v1268_v26 = vmul.f32 0.17677669, %v1260_v10  ;;  %v993_v28 = vld [vmem:[%s2341_s23 + $0x12] sm:$0x1]  ;;  %s2735_s10 = scalar_lea.vmem %s2767_s4, %s1781_s8 }
  0x8f   : > { %v1277_v30 = vld [vmem:[%s2341_s23 + $0xb] sm:$0x1]  ;;  %v1259_v34 = vld [vmem:[%s2332_s5 + $0x3] sm:$0x1]  ;;  %v984_v37 = vmul.f32 0.17677669, %v976_v14 }
  0x90   : > { %v1275_v38 = vld [vmem:[%s2341_s23 + $0x3] sm:$0x1]  ;;  %v1015_v41 = vrot.slane %v983_v19, 6  ;;  %v1262_v45 = vld [vmem:[%s2332_s5 + $0xf] sm:$0x1]  ;;  %v1323_v52 = vrot.slane %v1277_v30, 6 }
  0x91   : > { %v1278_v49 = vld [vmem:[%s2341_s23 + $0xf] sm:$0x1]  ;;  %v978_v62 = vld [vmem:[%s2332_s5 + $0x16] sm:$0x1]  ;;  %v985_v63 = vmul.f32 0.17677669, %v977_v24 }
  0x92   : > { %v1041_v4 = vrot.slane %v993_v28, 4  ;;  %v1017_v5 = vrot.slane %v984_v37, 5  ;;  %v1263_v10 = vld [vmem:[%s2332_s5 + $0x13] sm:$0x1]  ;;  %v986_v17 = vmul.f32 0.17677669, %v978_v62 }
  0x93   : > { %v1019_v23 = vrot.slane %v985_v63, 4  ;;  %v1264_v24 = vld [vmem:[%s2332_s5 + $0x17] sm:$0x1]  ;;  %v1271_v31 = vmul.f32 0.17677669, %v1263_v10  ;;  %s2114_s18 = smov 32  }
  0x94   : > { %v996_v47 = vld [vmem:[%s2341_s23 + $0x1e] sm:$0x1]  ;;  %v1021_v37 = vrot.slane %v986_v17, 3  ;;  %s2116_s27 = smov 96   ;;  %vm1571_vm11 = vcmask 523520   ;;  %vm1586_vm12 = vcmask 785920  }
  0x95   : > { %vm1601_vm13 = vcmask 1048320  }
 0x153   : > { %v2408_v54 = vpop.f32.mrb[0].mxu0 }
 0x154   : > { %v1823_v55 = vpop.f32.mrb[1].mxu0  ;;  %v555_v56 = vsel %vm554_vm10, %v2408_v54, -inf }
 0x155   : > { %556 = vmax.xlane.f32.xlu0 %v555_v56  ;;  %v695_v55 = vmul.f32 0.17677669, %v687_v35  ;;  %v727_v56 = vrot.slane %v696_v40, 7  ;;  %v1014_v40 = vsel %vm436_vm2, %v1013_v20, %v981_v18 }
 0x156   : > { %v1016_v27 = vsel %vm439_vm3, %v1015_v41, %v1014_v40  ;;  %v1281_v40 = vld [vmem:[%s2341_s23 + $0x1b] sm:$0x1] }
 0x157   : > { %v728_v12 = vsel %vm436_vm2, %v727_v56, %v695_v55  ;;  %v1267_v55 = vmul.f32 0.17677669, %v1259_v34  ;;  %v579_v56 = vunpack.c.l.bf16 %v2510_v22 }
 0x1e2   : > { %v557_v59 = vpop.xlane.xlu0 %556 }
 0x1e3   : > { %v2415_v60 = vmax.f32 %v2412_v58, %v557_v59  ;;  %v752_v59 = vsel %vm439_vm3, %v751_v29, %v750_v46  ;;  %v1039_v29 = vrot.slane %v992_v13, 5  ;;  %v1269_v46 = vmul.f32 0.17677669, %v1261_v25  ;;  %v1279_v13 = vld [vmem:[%s2341_s23 + $0x13] sm:$0x1] }
 0x1e4   : > { %v754_v11 = vsel %vm442_vm4, %v753_v32, %v752_v59  ;;  %v1321_v32 = vrot.slane %v1276_v15, 7  ;;  %v994_v59 = vld [vmem:[%s2341_s23 + $0x16] sm:$0x1]  ;;  %v1018_v25 = vsel %vm442_vm4, %v1017_v5, %v1016_v27  ;;  %v1327_v28 = vrot.slane %v1279_v13, 4 }
 0x1e5   : > { %v559_v61 = vsub.f32 %v2412_v58, %v2415_v60  ;;  %686 = vst.msk [vmem:[#allocation2] sm:$0xff] %vm381_vm9, %v2415_v60  ;;  %564 = vperm.xlu0 %1933, %v2415_v60   ;;  %v756_v36 = vsel %vm445_vm5, %v755_v33, %v754_v11  ;;  %v1299_v33 = vrot.slane %v1268_v26, 7  ;;  %v1270_v11 = vmul.f32 0.17677669, %v1262_v45  ;;  %v1280_v26 = vld [vmem:[%s2341_s23 + $0x17] sm:$0x1] }
 0x1e6   : > { %v1322_v1 = vsel %vm436_vm2, %v1321_v32, %v1275_v38  ;;  %v1301_v14 = vrot.slane %v1269_v46, 6  ;;  %v980_v32 = vld [vmem:[%s2332_s5 + $0x1e] sm:$0x1]  ;;  %v1265_v38 = vld [vmem:[%s2332_s5 + $0x1b] sm:$0x1]  ;;  %v1329_v41 = vrot.slane %v1280_v26, 3 }
 0x1e7   : > { %v1324_v18 = vsel %vm439_vm3, %v1323_v52, %v1322_v1  ;;  %v1300_v19 = vsel %vm436_vm2, %v1299_v33, %v1267_v55  ;;  %v1305_v45 = vrot.slane %v1271_v31, 4  ;;  %v988_v52 = vmul.f32 0.17677669, %v980_v32  ;;  %v2624_v32 = vld [vmem:[#allocation2 + $0x10] sm:$0xff] }
 0x1e8   : > { %v1273_v62 = vmul.f32 0.17677669, %v1265_v38 }
 0x264   : > { %v565_v16 = vpop.permute.xlu0 %564 }
 0x265   : > { %v567_v21 = vsub.f32 %v2408_v54, %v565_v16  ;;  %v730_v54 = vsel %vm439_vm3, %v729_v57, %v728_v12  ;;  %v758_v57 = vsel %vm448_vm6, %v757_v43, %v756_v36  ;;  %v1040_v12 = vsel %vm442_vm4, %v1039_v29, %v1038_v39  ;;  %v995_v16 = vld [vmem:[%s2341_s23 + $0x1a] sm:$0x1] }
 0x266   : > { %v732_v3 = vsel %vm442_vm4, %v731_v2, %v730_v54  ;;  %v1325_v43 = vrot.slane %v1278_v49, 5  ;;  %v760_v15 = vsel %vm451_vm7, %v759_v44, %v758_v57  ;;  %v979_v2 = vld [vmem:[%s2332_s5 + $0x1a] sm:$0x1]  ;;  %v1042_v44 = vsel %vm445_vm5, %v1041_v4, %v1040_v12 }
 0x267   : > { %v568_v35 = vmul.f32 1.442695, %v567_v21  ;;  %v734_v20 = vsel %vm445_vm5, %v733_v6, %v732_v3  ;;  %v1043_v21 = vrot.slane %v994_v59, 3  ;;  %v1303_v29 = vrot.slane %v1270_v11, 5  ;;  %v1266_v59 = vld [vmem:[%s2332_s5 + $0x1f] sm:$0x1] }
 0x268   : > { %v762_v30 = vsel %vm454_vm8, %v761_v53, %v760_v15  ;;  %v987_v6 = vmul.f32 0.17677669, %v979_v2  ;;  %v1326_v34 = vsel %vm442_vm4, %v1325_v43, %v1324_v18  ;;  %v736_v36 = vsel %vm448_vm6, %v735_v7, %v734_v20  ;;  %v1282_v3 = vld [vmem:[%s2341_s23 + $0x1f] sm:$0x1] }
 0x269   : > { %1935 = vpow2.f32 %v568_v35  ;;  %v1302_v35 = vsel %vm439_vm3, %v1301_v14, %v1300_v19  ;;  %v1045_v54 = vrot.slane %v995_v16, 2  ;;  %v1272_v39 = vmul.f32 0.17677669, %v1264_v24 }
 0x26a   : > { %v1044_v42 = vsel %vm448_vm6, %v1043_v21, %v1042_v44  ;;  %v1020_v53 = vsel %vm445_vm5, %v1019_v23, %v1018_v25  ;;  %v1047_v49 = vrot.slane %v996_v47, 1  ;;  %v1328_v48 = vsel %vm445_vm5, %v1327_v28, %v1326_v34 }
 0x26b   : > { %v1304_v7 = vsel %vm442_vm4, %v1303_v29, %v1302_v35  ;;  %v738_v33 = vsel %vm451_vm7, %v737_v8, %v736_v36  ;;  %v1023_v57 = vrot.slane %v987_v6, 2  ;;  %v1046_v63 = vsel %vm451_vm7, %v1045_v54, %v1044_v42  ;;  %v2619_v29 = vld [vmem:[#allocation2 + $0x8] sm:$0xff]  ;;  %v2634_v36 = vld [vmem:[#allocation2 + $0x18] sm:$0xff] }
 0x26c   : > { %v1022_v1 = vsel %vm448_vm6, %v1021_v37, %v1020_v53  ;;  %v1331_v4 = vrot.slane %v1281_v40, 2  ;;  %v1307_v5 = vrot.slane %v1272_v39, 3  ;;  %v1330_v10 = vsel %vm448_vm6, %v1329_v41, %v1328_v48  ;;  %v712_v39 = vld [vmem:[%s2423_s25 + $0x5] sm:$0x1]  ;;  %v713_v42 = vld [vmem:[%s2423_s25 + $0x9] sm:$0x1] }
 0x26d   : > { %v740_v50 = vsel %vm454_vm8, %v739_v9, %v738_v33  ;;  %v1025_v8 = vrot.slane %v988_v52, 1  ;;  %v1274_v11 = vmul.f32 0.17677669, %v1266_v59  ;;  %v1048_v12 = vsel %vm454_vm8, %v1047_v49, %v1046_v63  ;;  %v711_v41 = vld [vmem:[%s2423_s25 + $0x1] sm:$0x1] }
 0x26e   : > { %v1024_v27 = vsel %vm451_vm7, %v1023_v57, %v1022_v1  ;;  %v1333_v13 = vrot.slane %v1282_v3, 1  ;;  %v1309_v43 = vrot.slane %v1273_v62, 2  ;;  %v1332_v14 = vsel %vm451_vm7, %v1331_v4, %v1330_v10  ;;  %v715_v52 = vld [vmem:[%s2423_s25 + $0x11] sm:$0x1]  ;;  %v717_v59 = vld [vmem:[%s2423_s25 + $0x19] sm:$0x1] }
 0x26f   : > { %v1026_v51 = vsel %vm454_vm8, %v1025_v8, %v1024_v27  ;;  %v1311_v9 = vrot.slane %v1274_v11, 1  ;;  %v882_v53 = vrot.slane %v712_v39, 7  ;;  %v884_v49 = vrot.slane %v713_v42, 6  ;;  %v718_v1 = vld [vmem:[%s2423_s25 + $0x1d] sm:$0x1] }
 0x270   : > { %v1334_v16 = vsel %vm454_vm8, %v1333_v13, %v1332_v14  ;;  %v888_v57 = vrot.slane %v715_v52, 4  ;;  %v892_v4 = vrot.slane %v717_v59, 2  ;;  %v894_v10 = vrot.slane %v718_v1, 1  ;;  %v998_v11 = vld [vmem:[%s2423_s25 + $0x6] sm:$0x1] }
 0x271   : > { %v883_v48 = vsel %vm436_vm2, %v882_v53, %v711_v41  ;;  %v1168_v27 = vrot.slane %v998_v11, 7  ;;  %v997_v13 = vld [vmem:[%s2423_s25 + $0x2] sm:$0x1]  ;;  %v1000_v14 = vld [vmem:[%s2423_s25 + $0xe] sm:$0x1] }
 0x272   : > { %v885_v33 = vsel %vm439_vm3, %v884_v49, %v883_v48  ;;  %v1287_v42 = vld [vmem:[%s2423_s25 + $0x13] sm:$0x1]  ;;  %v1289_v1 = vld [vmem:[%s2423_s25 + $0x1b] sm:$0x1]  ;;  %v1290_v11 = vld [vmem:[%s2423_s25 + $0x1f] sm:$0x1] }
 0x273   : > { %v2565_v46 = vpop.eup %1935 }
 0x274   : > { %v580_v55 = vmul.f32 %v2565_v46, %v579_v56  ;;  %v1306_v56 = vsel %vm445_vm5, %v1305_v45, %v1304_v7  ;;  %v714_v45 = vld [vmem:[%s2423_s25 + $0xd] sm:$0x1]  ;;  %v572_v8 = vsel %vm554_vm10, %v2565_v46, 0.0 }
 0x275   : > { %v1308_v15 = vsel %vm448_vm6, %v1307_v5, %v1306_v56  ;;  %v886_v7 = vrot.slane %v714_v45, 5  ;;  %v1003_v45 = vld [vmem:[%s2423_s25 + $0x1a] sm:$0x1] }
 0x276   : > { %1827 = vmatmul.mubr.msk.f32.vlgmr.msra.gmra.mrb[0].mxu1 %vm554_vm10, %v580_v55  ;;  %v1310_v2 = vsel %vm451_vm7, %v1309_v43, %v1308_v15  ;;  %v716_v55 = vld [vmem:[%s2423_s25 + $0x15] sm:$0x1]  ;;  %v1284_v43 = vld [vmem:[%s2423_s25 + $0x7] sm:$0x1] }
 0x277   : > { %1830 = vmatpush3.xpose.msk.msra.mxu1 %vm390_vm0, %v762_v30  ;;  %1831 = vmatprep.mubr.msk.f32.mxu1 %vm2111_vm1, %v2110_v0  ;;  %v1312_v17 = vsel %vm454_vm8, %v1311_v9, %v1310_v2  ;;  %v887_v62 = vsel %vm442_vm4, %v886_v7, %v885_v33  ;;  %v890_v63 = vrot.slane %v716_v55, 3  ;;  %v1285_v9 = vld [vmem:[%s2423_s25 + $0xb] sm:$0x1]  ;;  %v1283_v2 = vld [vmem:[%s2423_s25 + $0x3] sm:$0x1]  ;;  %v1460_v55 = vrot.slane %v1287_v42, 4 }
 0x278   : > { %1839 = vmatprep.subr.mxu1 %v2110_v0  ;;  %v889_v3 = vsel %vm445_vm5, %v888_v57, %v887_v62  ;;  %v1288_v7 = vld [vmem:[%s2423_s25 + $0x17] sm:$0x1]  ;;  %v1004_v62 = vld [vmem:[%s2423_s25 + $0x1e] sm:$0x1] }
 0x279   : > { %v891_v5 = vsel %vm448_vm6, %v890_v63, %v889_v3  ;;  %v1178_v63 = vrot.slane %v1003_v45, 2  ;;  %v1462_v3 = vrot.slane %v1288_v7, 3  ;;  %v1427_v42 = vld [vmem:[#allocation3 + $0x18] sm:$0xff] }
 0x27a   : > { %1832 = vmatmul.mubr.msk.f32.vlgmr.msra.gmra.mrb[2].mxu1 %vm390_vm0, %v740_v50  ;;  %v893_v56 = vsel %vm451_vm7, %v892_v4, %v891_v5 }
 0x27b   : > { %1840 = vmatpush3.xpose.msk.msra.mxu1 %vm390_vm0, %v1048_v12  ;;  %1841 = vmatprep.mubr.msk.f32.mxu1 %vm2111_vm1, %v2110_v0  ;;  %v895_v50 = vsel %vm454_vm8, %v894_v10, %v893_v56  ;;  %v999_v12 = vld [vmem:[%s2423_s25 + $0xa] sm:$0x1]  ;;  %v864_v10 = vunpack.c.h.bf16 %v2510_v22  ;;  %v1180_v56 = vrot.slane %v1004_v62, 1 }
 0x27c   : > { %1849 = vmatprep.subr.mxu1 %v2110_v0  ;;  %1835 = vmatpush3.msra.mxu0 %v895_v50  ;;  %v1170_v15 = vrot.slane %v999_v12, 6  ;;  %v1791_v50 = vld [vmem:[%s2496_s9 + $0x8] sm:$0xff]   ;;  %v1464_v12 = vrot.slane %v1289_v1, 2 }
 0x27d   : > { %1844 = vmatprep.subr.mxu0 %v2110_v0 }
 0x27e   : > { %1842 = vmatmul.mubr.msk.f32.vlgmr.msra.gmra.mrb[4].mxu1 %vm390_vm0, %v1026_v51  ;;  %v1169_v51 = vsel %vm436_vm2, %v1168_v27, %v997_v13  ;;  %v1150_v13 = vunpack.c.l.bf16 %v1791_v50 }
 0x27f   : > { %1850 = vmatpush3.xpose.msk.msra.mxu1 %vm390_vm0, %v1334_v16  ;;  %1851 = vmatprep.mubr.msk.f32.mxu1 %vm2111_vm1, %v2110_v0  ;;  %v1454_v16 = vrot.slane %v1284_v43, 7 }
 0x282   : > { %1852 = vmatmul.mubr.msk.f32.vlgmr.msra.gmra.mrb[6].mxu1 %vm390_vm0, %v1312_v17 }
 0x349   : > { %v2605_v18 = vpop.f32.mrb[0].mxu1 }
 0x34a   : > { %v1828_v19 = vpop.f32.mrb[1].mxu1 }
 0x34b   : > { %v1001_v19 = vld [vmem:[%s2423_s25 + $0x12] sm:$0x1] }
 0x34d   : > { %v2607_v20 = vpop.f32.mrb[2].mxu1 }
 0x34e   : > { %v1833_v21 = vpop.f32.mrb[3].mxu1  ;;  %v839_v23 = vsel %vm554_vm10, %v2607_v20, -inf }
 0x34f   : > { %840 = vmax.xlane.f32.xlu1 %v839_v23  ;;  %v1172_v21 = vrot.slane %v1000_v14, 5  ;;  %v1171_v23 = vsel %vm439_vm3, %v1170_v15, %v1169_v51  ;;  %v1466_v51 = vrot.slane %v1290_v11, 1 }
 0x351   : > { %v2611_v24 = vpop.f32.mrb[4].mxu1  ;;  %v1173_v39 = vsel %vm442_vm4, %v1172_v21, %v1171_v23 }
 0x352   : > { %v1843_v31 = vpop.f32.mrb[5].mxu1  ;;  %v1125_v44 = vsel %vm554_vm10, %v2611_v24, -inf }
 0x353   : > { %1126 = vmax.xlane.f32.xlu1 %v1125_v44  ;;  %v1286_v31 = vld [vmem:[%s2423_s25 + $0xf] sm:$0x1]  ;;  %v1456_v44 = vrot.slane %v1285_v9, 6 }
 0x354   : > { %v1458_v53 = vrot.slane %v1286_v31, 5 }
 0x355   : > { %v2615_v25 = vpop.f32.mrb[6].mxu1 }
 0x356   : > { %v1853_v26 = vpop.f32.mrb[7].mxu1  ;;  %v1411_v28 = vsel %vm554_vm10, %v2615_v25, -inf }
 0x357   : > { %1412 = vmax.xlane.f32.xlu1 %v1411_v28  ;;  %v1455_v26 = vsel %vm436_vm2, %v1454_v16, %v1283_v2 }
 0x358   : > { %v1457_v41 = vsel %vm439_vm3, %v1456_v44, %v1455_v26 }
 0x359   : > { %v1459_v57 = vsel %vm442_vm4, %v1458_v53, %v1457_v41 }
 0x35a   : > { %v1461_v5 = vsel %vm445_vm5, %v1460_v55, %v1459_v57 }
 0x3dc   : > { %v841_v30 = vpop.xlane.xlu1 %840 }
 0x3dd   : > { %v2622_v47 = vmax.f32 %v2619_v29, %v841_v30  ;;  %v1002_v30 = vld [vmem:[%s2423_s25 + $0x16] sm:$0x1] }
 0x3de   : > { %v1176_v49 = vrot.slane %v1002_v30, 3  ;;  %v1141_v30 = vld [vmem:[#allocation3 + $0x10] sm:$0xff] }
 0x3df   : > { %v843_v6 = vsub.f32 %v2619_v29, %v2622_v47  ;;  %972 = vst.msk [vmem:[#allocation2 + $0x8] sm:$0xff] %vm381_vm9, %v2622_v47  ;;  %848 = vperm.xlu1 %1934, %v2622_v47   ;;  %v570_v47 = vld [vmem:[#allocation3] sm:$0xff] }
 0x3e0   : > { %v1127_v34 = vpop.xlane.xlu1 %1126 }
 0x3e1   : > { %v2632_v35 = vmax.f32 %v2624_v32, %v1127_v34  ;;  %v1174_v34 = vrot.slane %v1001_v19, 4  ;;  %v1436_v19 = vunpack.c.h.bf16 %v1791_v50  ;;  %v844_v44 = vmul.f32 1.442695, %v843_v6 }
 0x3e3   : > { %v1129_v54 = vsub.f32 %v2624_v32, %v2632_v35  ;;  %1258 = vst.msk [vmem:[#allocation2 + $0x10] sm:$0xff] %vm381_vm9, %v2632_v35  ;;  %1134 = vperm.xlu1 %1934, %v2632_v35   ;;  %v1175_v48 = vsel %vm445_vm5, %v1174_v34, %v1173_v39 }
 0x3e4   : > { %v1413_v37 = vpop.xlane.xlu1 %1412 }
 0x3e5   : > { %v2642_v38 = vmax.f32 %v2634_v36, %v1413_v37  ;;  %v1130_v26 = vmul.f32 1.442695, %v1129_v54  ;;  %v855_v54 = vld [vmem:[#allocation3 + $0x8] sm:$0xff] }
 0x3e7   : > { %v1415_v40 = vsub.f32 %v2634_v36, %v2642_v38  ;;  %1544 = vst.msk [vmem:[#allocation2 + $0x18] sm:$0xff] %vm381_vm9, %v2642_v38  ;;  %1420 = vperm.xlu1 %1934, %v2642_v38  }
 0x40b   : > { %573 = vadd.xlane.f32.xlu1 %v572_v8 }
 0x45e   : > { %v849_v17 = vpop.permute.xlu1 %848 }
 0x45f   : > { %v851_v46 = vsub.f32 %v2607_v20, %v849_v17 }
 0x461   : > { %v852_v28 = vmul.f32 1.442695, %v851_v46  ;;  %v560_v46 = vmul.f32 1.442695, %v559_v61 }
 0x462   : > { %v1135_v37 = vpop.permute.xlu1 %1134 }
 0x463   : > { %1937 = vpow2.f32 %v852_v28  ;;  %v1137_v20 = vsub.f32 %v2611_v24, %v1135_v37  ;;  %v1177_v24 = vsel %vm448_vm6, %v1176_v49, %v1175_v48 }
 0x464   : > { %v1179_v8 = vsel %vm451_vm7, %v1178_v63, %v1177_v24 }
 0x465   : > { %v1138_v52 = vmul.f32 1.442695, %v1137_v20  ;;  %v1181_v15 = vsel %vm454_vm8, %v1180_v56, %v1179_v8  ;;  %v581_v20 = vld [vmem:[#allocation4] sm:$0xff]  ;;  %v1153_v56 = vld [vmem:[#allocation4 + $0x10] sm:$0xff] }
 0x466   : > { %v1421_v33 = vpop.permute.xlu1 %1420 }
 0x467   : > { %1939 = vpow2.f32 %v1138_v52  ;;  %v1423_v59 = vsub.f32 %v2615_v25, %v1421_v33  ;;  %v1463_v25 = vsel %vm448_vm6, %v1462_v3, %v1461_v5  ;;  %v867_v5 = vld [vmem:[#allocation4 + $0x8] sm:$0xff] }
 0x468   : > { %v1465_v22 = vsel %vm451_vm7, %v1464_v12, %v1463_v25 }
 0x469   : > { %v1424_v4 = vmul.f32 1.442695, %v1423_v59  ;;  %v1467_v17 = vsel %vm454_vm8, %v1466_v51, %v1465_v22 }
 0x46b   : > { %1941 = vpow2.f32 %v1424_v4 }
 0x46c   : > { %1943 = vpow2.f32 %v560_v46 }
 0x46d   : > { %v1938_v27 = vpop.eup %1937  ;;  %1945 = vpow2.f32 %v844_v44 }
 0x46e   : > { %v857_v43 = vsel %vm554_vm10, %v1938_v27, 0.0  ;;  %v865_v14 = vmul.f32 %v1938_v27, %v864_v10  ;;  %1947 = vpow2.f32 %v1130_v26  ;;  %v1439_v27 = vld [vmem:[#allocation4 + $0x18] sm:$0xff] }
 0x46f   : > { %858 = vadd.xlane.f32.xlu0 %v857_v43 }
 0x470   : > { %1837 = vmatmul.mubr.msk.f32.vlgmr.msra.gmra.mrb[2].mxu0 %vm554_vm10, %v865_v14 }
 0x471   : > { %v1940_v9 = vpop.eup %1939  ;;  %1845 = vmatpush3.msra.mxu0 %v1181_v15  ;;  %1846 = vmatprep.mubr.msk.f32.mxu0 %vm2111_vm1, %v2110_v0 }
 0x472   : > { %v1143_v16 = vsel %vm554_vm10, %v1940_v9, 0.0  ;;  %v1151_v2 = vmul.f32 %v1940_v9, %v1150_v13  ;;  %1854 = vmatprep.subr.mxu0 %v2110_v0 }
 0x473   : > { %1144 = vadd.xlane.f32.xlu1 %v1143_v16 }
 0x474   : > { %1847 = vmatmul.mubr.msk.f32.vlgmr.msra.gmra.mrb[4].mxu0 %vm554_vm10, %v1151_v2 }
 0x475   : > { %v1942_v21 = vpop.eup %1941  ;;  %1855 = vmatpush3.msra.mxu0 %v1467_v17  ;;  %1856 = vmatprep.mubr.msk.f32.mxu0 %vm2111_vm1, %v2110_v0  ;;  %v1416_v0 = vmul.f32 1.442695, %v1415_v40 }
 0x476   : > { %v1429_v23 = vsel %vm554_vm10, %v1942_v21, 0.0  ;;  %v1437_v31 = vmul.f32 %v1942_v21, %v1436_v19  ;;  %v1944_v58 = vpop.eup %1943 }
 0x477   : > { %1430 = vadd.xlane.f32.xlu1 %v1429_v23  ;;  %1949 = vpow2.f32 %v1416_v0  ;;  %v1946_v60 = vpop.eup %1945  ;;  %v571_v6 = vmul.f32 %v1944_v58, %v570_v47 }
 0x478   : > { %1857 = vmatmul.mubr.msk.f32.vlgmr.msra.gmra.mrb[6].mxu0 %vm554_vm10, %v1437_v31  ;;  %v1948_v61 = vpop.eup %1947  ;;  %v856_v38 = vmul.f32 %v1946_v60, %v855_v54 }
 0x479   : > { %v1142_v37 = vmul.f32 %v1948_v61, %v1141_v30 }
 0x481   : > { %v1950_v29 = vpop.eup %1949 }
 0x482   : > { %v1428_v41 = vmul.f32 %v1950_v29, %v1427_v42 }
 0x485   : > { %584 = vperm.xlu0 %1933, %v1944_v58  }
 0x488   : > { %870 = vperm.xlu1 %1934, %v1946_v60  }
 0x489   : > { %1156 = vperm.xlu0 %1933, %v1948_v61  }
 0x48c   : > { %1442 = vperm.xlu1 %1934, %v1950_v29  }
 0x498   : > { %v574_v28 = vpop.xlane.xlu1 %573 }
 0x499   : > { %v575_v32 = vadd.f32 %v574_v28, %v571_v6 }
 0x49b   : > { %577 = vst.msk [vmem:[#allocation3] sm:$0xff] %vm381_vm9, %v575_v32 }
 0x4a2   : > { %v1548_v35 = vld [vmem:[#allocation3] sm:$0xff] }
 0x4a3   : > { %1951 = vrcp.f32 %v1548_v35 }
 0x4ad   : > { %v1952_v36 = vpop.eup %1951 }
 0x4ae   : > { %1553 = vperm.xlu1 %1934, %v1952_v36  }
 0x4fc   : > { %v859_v40 = vpop.xlane.xlu0 %858 }
 0x4fd   : > { %v860_v34 = vadd.f32 %v859_v40, %v856_v38 }
 0x4ff   : > { %861 = vst.msk [vmem:[#allocation3 + $0x8] sm:$0xff] %vm381_vm9, %v860_v34 }
 0x500   : > { %v1145_v39 = vpop.xlane.xlu1 %1144 }
 0x501   : > { %v1146_v53 = vadd.f32 %v1145_v39, %v1142_v37 }
 0x503   : > { %1147 = vst.msk [vmem:[#allocation3 + $0x10] sm:$0xff] %vm381_vm9, %v1146_v53 }
 0x504   : > { %v1431_v45 = vpop.xlane.xlu1 %1430  ;;  %v585_v49 = vpop.permute.xlu0 %584 }
 0x505   : > { %v1432_v52 = vadd.f32 %v1431_v45, %v1428_v41  ;;  %v587_v48 = vmul.f32 %v585_v49, %v581_v20 }
 0x506   : > { %v1558_v7 = vld [vmem:[#allocation3 + $0x8] sm:$0xff] }
 0x507   : > { %1433 = vst.msk [vmem:[#allocation3 + $0x18] sm:$0xff] %vm381_vm9, %v1432_v52  ;;  %v684_v55 = vadd.f32 %v2605_v18, %v587_v48  ;;  %1953 = vrcp.f32 %v1558_v7 }
 0x508   : > { %v871_v24 = vpop.permute.xlu1 %870  ;;  %v1157_v50 = vpop.permute.xlu0 %1156 }
 0x509   : > { %685 = vst.msk [vmem:[#allocation4] sm:$0xff] %vm390_vm0, %v684_v55  ;;  %v873_v10 = vmul.f32 %v871_v24, %v867_v5  ;;  %v1159_v25 = vmul.f32 %v1157_v50, %v1153_v56 }
 0x50a   : > { %v1573_v33 = vld [vmem:[#allocation3 + $0x10] sm:$0xff] }
 0x50b   : > { %1955 = vrcp.f32 %v1573_v33 }
 0x50c   : > { %v1443_v1 = vpop.permute.xlu1 %1442 }
 0x50d   : > { %v1445_v15 = vmul.f32 %v1443_v1, %v1439_v27 }
 0x50e   : > { %v1588_v57 = vld [vmem:[#allocation3 + $0x18] sm:$0xff] }
 0x50f   : > { %1957 = vrcp.f32 %v1588_v57 }
 0x510   : > { %v1550_v18 = vld [vmem:[#allocation4] sm:$0xff] }
 0x511   : > { %v1954_v59 = vpop.eup %1953 }
 0x512   : > { %1563 = vperm.xlu0 %1933, %v1954_v59  }
 0x515   : > { %v1956_v62 = vpop.eup %1955 }
 0x516   : > { %1578 = vperm.xlu0 %1933, %v1956_v62  }
 0x519   : > { %v1958_v63 = vpop.eup %1957 }
 0x51a   : > { %1593 = vperm.xlu0 %1933, %v1958_v63  }
 0x52d   : > { %v1554_v3 = vpop.permute.xlu1 %1553 }
 0x52e   : > { %v1556_v4 = vmul.f32 %v1554_v3, %v1550_v18 }
 0x530   : > { %1557 = vst.msk [vmem:[%s2735_s10] sm:$0xff] %vm390_vm0, %v1556_v4 }
 0x543   : > { %v966_v8 = vpop.f32.mrb[2].mxu0 }
 0x544   : > { %v970_v11 = vadd.f32 %v966_v8, %v873_v10  ;;  %v1838_v12 = vpop.f32.mrb[3].mxu0 }
 0x546   : > { %971 = vst.msk [vmem:[#allocation4 + $0x8] sm:$0xff] %vm390_vm0, %v970_v11 }
 0x547   : > { %v1252_v13 = vpop.f32.mrb[4].mxu0 }
 0x548   : > { %v1256_v43 = vadd.f32 %v1252_v13, %v1159_v25  ;;  %v1848_v14 = vpop.f32.mrb[5].mxu0 }
 0x54a   : > { %1257 = vst.msk [vmem:[#allocation4 + $0x10] sm:$0xff] %vm390_vm0, %v1256_v43 }
 0x54b   : > { %v1538_v51 = vpop.f32.mrb[6].mxu0 }
 0x54c   : > { %v1542_v22 = vadd.f32 %v1538_v51, %v1445_v15  ;;  %v1858_v9 = vpop.f32.mrb[7].mxu0 }
 0x54d   : > { %v1560_v16 = vld [vmem:[#allocation4 + $0x8] sm:$0xff] }
 0x54e   : > { %1543 = vst.msk [vmem:[#allocation4 + $0x18] sm:$0xff] %vm390_vm0, %v1542_v22 }
 0x551   : > { %v1575_v19 = vld [vmem:[#allocation4 + $0x10] sm:$0xff] }
 0x555   : > { %v1590_v23 = vld [vmem:[#allocation4 + $0x18] sm:$0xff] }
 0x591   : > { %v1564_v2 = vpop.permute.xlu0 %1563 }
 0x592   : > { %v1566_v17 = vmul.f32 %v1564_v2, %v1560_v16 }
 0x594   : > { %1568 = vrot.lane.b32.xlu1 %v1566_v17, %s2114_s18 }
 0x595   : > { %v1579_v21 = vpop.permute.xlu0 %1578 }
 0x596   : > { %v1581_v46 = vmul.f32 %v1579_v21, %v1575_v19 }
 0x598   : > { %1583 = vrot.lane.b32.xlu1 %v1581_v46, %s2115_s24 }
 0x599   : > { %v1594_v31 = vpop.permute.xlu0 %1593 }
 0x59a   : > { %v1596_v44 = vmul.f32 %v1594_v31, %v1590_v23 }
 0x59c   : > { %1598 = vrot.lane.b32.xlu1 %v1596_v44, %s2116_s27 }
 0x606   : > { %v1569_v26 = vpop.permute.xlu1 %1568 }
 0x607   : > { %1572 = vst.msk [vmem:[%s2735_s10] sm:$0xff] %vm1571_vm11, %v1569_v26 }
 0x60a   : > { %v1584_v0 = vpop.permute.xlu1 %1583 }
 0x60b   : > { %1587 = vst.msk [vmem:[%s2735_s10] sm:$0xff] %vm1586_vm12, %v1584_v0 }
 0x60e   : > { %v1599_v58 = vpop.permute.xlu1 %1598 }
 0x60f   : > { %1602 = vst.msk [vmem:[%s2735_s10] sm:$0xff] %vm1601_vm13, %v1599_v58 }
 0x610 PF: > { %s20_s20 = sadd.s32 1, %s2103_s20   ;;  %s2781_s15 = smov %s2087_s16 }
 0x611   : > { %p17_p2 = scmp.ge.s32.totalorder %s20_s20, 4   ;;  %s2782_s16 = smov %s2091_s17 }
 0x612   : > { %s2783_s17 = smov %s2189_s26  ;;  %s2784_s18 = smov %s2099_s19 }
 0x613   : > { %s2785_s19 = smov %s2787_s22  ;;  %19 = sbr.rel (!%p17_p2) target bundleno = 6 (0x6), region = 123 }
 0x61a   :  { %1628 = vsyncpa [#allocation6], 1 }
 0x61b   :  { %1630 = vsyncpa [#allocation6 + $0x1], 1 }
 0x61c   :  { %1631 = vsyncpa [#allocation8], 1 }
 0x61d   :  { %1633 = vsyncpa [#allocation8 + $0x1], 1 }

</bundles_post_ra>
